<compile_context>
chip_gen: v5e
topology: v5e:2x2
jax: 0.10.0
libtpu: 0.0.40
codegen_flags: <defaults>
</compile_context>

<pallas_src>
import jax
import jax.numpy as jnp
from jax.experimental import pallas as pl
from jax.experimental.pallas import tpu as pltpu


def graphsage_kernel(adj_ref, feats_agg_ref, feats_self_ref,
                     w_self_t_ref, w_neigh_t_ref, w_cls_t_ref,
                     out_ref, neigh_acc_ref):
    # adj_ref:        (TM, TK)    bf16 — row-normalized adjacency tile
    # feats_agg_ref:  (TK, F)     bf16 — neighbor-feature chunk for this k step
    # feats_self_ref: (TM, F)     bf16 — self features for this row block (const over k)
    # w_self_t_ref:   (F, E) bf16   w_neigh_t_ref: (F, E) bf16   w_cls_t_ref: (E, Cp) bf16
    # out_ref:        (TM, Cp)    f32
    # neigh_acc_ref:  (TM, F)     f32 VMEM scratch — MeanAggregator accumulator
    k = pl.program_id(1)

    @pl.when(k == 0)
    def _():
        neigh_acc_ref[...] = jnp.zeros_like(neigh_acc_ref)

    # MeanAggregator partial sum: (TM, TK) @ (TK, F) -> (TM, F), f32 MXU accumulation.
    neigh_acc_ref[...] += jnp.dot(adj_ref[...], feats_agg_ref[...],
                                  preferred_element_type=jnp.float32)

    @pl.when(k == pl.num_programs(1) - 1)
    def _():
        # Encoder: relu( self @ W_self^T + neigh @ W_neigh^T ) -> (TM, E).
        # The f32 accumulator is downcast to bf16 only after the full k reduction.
        h = (jnp.dot(feats_self_ref[...], w_self_t_ref[...],
                     preferred_element_type=jnp.float32)
             + jnp.dot(neigh_acc_ref[...].astype(jnp.bfloat16), w_neigh_t_ref[...],
                       preferred_element_type=jnp.float32))
        embeds = jnp.maximum(h, 0.0).astype(jnp.bfloat16)
        # Classifier: (W_cls @ embeds.T).T == embeds @ W_cls^T -> (TM, Cp), lane-dense.
        out_ref[...] = jnp.dot(embeds, w_cls_t_ref[...],
                               preferred_element_type=jnp.float32)


def supervised_graphsage(adj_norm, feats, w_self, w_neigh, w_cls, *, tm=256, tk=512):
    N, F = feats.shape
    E = w_self.shape[0]
    C = w_cls.shape[0]
    c_pad = pl.cdiv(C, 128) * 128                     # lane-dense output width

    # Zero-pad nodes to tile multiples so out-of-range adj/feats entries contribute
    # exactly zero (Pallas tail-block padding would otherwise be undefined data).
    n_rows = pl.cdiv(N, tm) * tm                      # padded node (row) count
    n_cols = pl.cdiv(N, tk) * tk                      # padded neighbor (reduction) count
    n_feat_rows = max(n_rows, n_cols)

    # Wrapper-side layout plumbing: bf16 cast, zero-pad, pre-transpose weights.
    adj_p = jnp.zeros((n_rows, n_cols), jnp.bfloat16).at[:N, :N].set(
        adj_norm.astype(jnp.bfloat16))
    feats_p = jnp.zeros((n_feat_rows, F), jnp.bfloat16).at[:N, :].set(
        feats.astype(jnp.bfloat16))
    w_self_t = w_self.T.astype(jnp.bfloat16)          # (F, E)
    w_neigh_t = w_neigh.T.astype(jnp.bfloat16)        # (F, E)
    w_cls_t = jnp.zeros((E, c_pad), jnp.bfloat16).at[:, :C].set(
        w_cls.T.astype(jnp.bfloat16))                 # (E, c_pad)

    grid = (n_rows // tm, n_cols // tk)

    cost = pl.CostEstimate(
        flops=2 * n_rows * n_cols * F + 4 * n_rows * F * E + 2 * n_rows * E * c_pad,
        transcendentals=0,
        bytes_accessed=(2 * n_rows * n_cols                   # adj (bf16)
                        + 2 * (n_rows // tm) * n_cols * F     # feats streamed per row block
                        + 2 * n_rows * F                      # self-feature row tiles
                        + 2 * (2 * F * E + E * c_pad)         # weights (bf16)
                        + 4 * n_rows * c_pad),                # f32 output
    )

    out = pl.pallas_call(
        graphsage_kernel,
        out_shape=jax.ShapeDtypeStruct((n_rows, c_pad), jnp.float32),
        grid_spec=pltpu.PrefetchScalarGridSpec(
            num_scalar_prefetch=0,
            grid=grid,
            in_specs=[
                pl.BlockSpec((tm, tk), lambda i, k: (i, k)),     # adj tile
                pl.BlockSpec((tk, F), lambda i, k: (k, 0)),      # feats chunk (aggregation)
                pl.BlockSpec((tm, F), lambda i, k: (i, 0)),      # self feats (const over k)
                pl.BlockSpec((F, E), lambda i, k: (0, 0)),       # W_self^T (resident)
                pl.BlockSpec((F, E), lambda i, k: (0, 0)),       # W_neigh^T (resident)
                pl.BlockSpec((E, c_pad), lambda i, k: (0, 0)),   # W_cls^T padded (resident)
            ],
            out_specs=pl.BlockSpec((tm, c_pad), lambda i, k: (i, 0)),
            scratch_shapes=[pltpu.VMEM((tm, F), jnp.float32)],   # f32 neigh accumulator
        ),
        compiler_params=pltpu.CompilerParams(
            dimension_semantics=("parallel", "arbitrary"),
        ),
        cost_estimate=cost,
    )(adj_p, feats_p, feats_p, w_self_t, w_neigh_t, w_cls_t)

    return out[:N, :C]


def xavier_uniform(key, shape):
    fan_out, fan_in = shape
    bound = (6.0 / (fan_in + fan_out)) ** 0.5
    return jax.random.uniform(key, shape, jnp.float32, -bound, bound)


if __name__ == "__main__":
    # Small, deterministic synthetic graph + parameters (Cora-like dims).
    # N=500 with tm=tk=256 exercises a 2x2 grid (parallel rows x reduction chunks)
    # plus the wrapper-side zero-padding path; C=7 exercises the lane-pad slicing.
    N = 500            # number of nodes in the batch
    F = 128            # raw feature dim
    E = 128            # enc.embed_dim
    C = 7              # num_classes

    key = jax.random.PRNGKey(0)
    k_feat, k_adj, k_enc, k_cls = jax.random.split(key, 4)

    feats = jax.random.normal(k_feat, (N, F), jnp.float32)

    # Random neighbor sets (no self-loops, gcn=False), mean-normalized rows.
    adj = (jax.random.uniform(k_adj, (N, N)) < 0.1).astype(jnp.float32)
    adj = adj * (1.0 - jnp.eye(N, dtype=jnp.float32))
    deg = jnp.maximum(adj.sum(axis=1, keepdims=True), 1.0)
    adj_norm = adj / deg

    # Encoder weight (embed_dim, 2*feat_dim), xavier-uniform; split into self/neigh halves.
    w_enc = xavier_uniform(k_enc, (E, 2 * F))
    w_self, w_neigh = w_enc[:, :F], w_enc[:, F:]
    # Classifier weight (num_classes, embed_dim), xavier-uniform.
    w_cls = xavier_uniform(k_cls, (C, E))

    scores = supervised_graphsage(adj_norm, feats, w_self, w_neigh, w_cls,
                                  tm=256, tk=256)
    scores = jax.block_until_ready(scores)

    # Pure-JAX reference mirroring the kernel's bf16-operand / f32-accumulate arithmetic.
    def bf(x):
        return x.astype(jnp.bfloat16).astype(jnp.float32)

    neigh_ref = bf(adj_norm) @ bf(feats)
    h_ref = bf(feats) @ bf(w_self).T + bf(neigh_ref) @ bf(w_neigh).T
    embeds_ref = bf(jnp.maximum(h_ref, 0.0))
    scores_ref = embeds_ref @ bf(w_cls).T

    # Full-f32 reference (original module semantics) for a looser sanity check.
    neigh_f32 = adj_norm @ feats
    scores_f32 = jnp.maximum(feats @ w_self.T + neigh_f32 @ w_neigh.T, 0.0) @ w_cls.T

    assert scores.shape == (N, C)
    assert jnp.allclose(scores, scores_ref, atol=1e-2, rtol=1e-2)
    assert jnp.allclose(scores, scores_f32, atol=1e-1, rtol=1e-1)
    print("KERNEL_OK")
</pallas_src>

<mosaic_0001>
module attributes {stable_mosaic.version = 11 : i64} {
  func.func @graphsage_kernel(%arg0: i32, %arg1: i32, %arg2: memref<256x256xbf16, #tpu.memory_space<vmem>>, %arg3: memref<256x128xbf16, #tpu.memory_space<vmem>>, %arg4: memref<256x128xbf16, #tpu.memory_space<vmem>>, %arg5: memref<128x128xbf16, #tpu.memory_space<vmem>>, %arg6: memref<128x128xbf16, #tpu.memory_space<vmem>>, %arg7: memref<128x128xbf16, #tpu.memory_space<vmem>>, %arg8: memref<256x128xf32, #tpu.memory_space<vmem>>, %arg9: memref<256x128xf32, #tpu.memory_space<vmem>>) attributes {dimension_semantics = [#tpu.dimension_semantics<parallel>, #tpu.dimension_semantics<arbitrary>], iteration_bounds = array<i64: 2, 2>, scalar_prefetch = 0 : i64, scratch_operands = 1 : i64, tpu.core_type = #tpu.core_type<tc>, window_params = [{transform_indices = @transform_0, window_bounds = array<i64: 256, 256>}, {transform_indices = @transform_1, window_bounds = array<i64: 256, 128>}, {transform_indices = @transform_2, window_bounds = array<i64: 256, 128>}, {pipeline_mode = #tpu.pipeline_mode<synchronous>, transform_indices = @transform_3, window_bounds = array<i64: 128, 128>}, {pipeline_mode = #tpu.pipeline_mode<synchronous>, transform_indices = @transform_4, window_bounds = array<i64: 128, 128>}, {pipeline_mode = #tpu.pipeline_mode<synchronous>, transform_indices = @transform_5, window_bounds = array<i64: 128, 128>}, {transform_indices = @transform_6, window_bounds = array<i64: 256, 128>}]} {
    %c0_i32 = arith.constant 0 : i32
    %0 = arith.cmpi eq, %arg1, %c0_i32 : i32
    %1 = arith.extui %0 : i1 to i32
    %c0_i32_0 = arith.constant 0 : i32
    %2 = arith.cmpi ne, %1, %c0_i32_0 : i32
    scf.if %2 {
      %cst_9 = arith.constant 0.000000e+00 : f32
      %12 = vector.broadcast %cst_9 : f32 to vector<256x128xf32>
      %c0_10 = arith.constant 0 : index
      %c0_11 = arith.constant 0 : index
      %13 = vector.load %arg9[%c0_10, %c0_11] : memref<256x128xf32, #tpu.memory_space<vmem>>, vector<256x128xf32>
      tpu.vector_store %arg9[%c0_10, %c0_11], %12 {strides = array<i32>} : memref<256x128xf32, #tpu.memory_space<vmem>>, vector<256x128xf32>,
    } else {
    }
    %c0 = arith.constant 0 : index
    %c0_1 = arith.constant 0 : index
    %3 = vector.load %arg9[%c0, %c0_1] : memref<256x128xf32, #tpu.memory_space<vmem>>, vector<256x128xf32>
    %c0_2 = arith.constant 0 : index
    %c0_3 = arith.constant 0 : index
    %4 = vector.load %arg2[%c0_2, %c0_3] : memref<256x256xbf16, #tpu.memory_space<vmem>>, vector<256x256xbf16>
    %c0_4 = arith.constant 0 : index
    %c0_5 = arith.constant 0 : index
    %5 = vector.load %arg3[%c0_4, %c0_5] : memref<256x128xbf16, #tpu.memory_space<vmem>>, vector<256x128xbf16>
    %cst = arith.constant dense<0.000000e+00> : vector<256x128xf32>
    %6 = tpu.matmul %4, %5, %cst {dimension_numbers = #tpu.dot_dimension_numbers<[1], [0], [0], [1], [0, 0, 1, 1], [], []>} : vector<256x256xbf16>, vector<256x128xbf16>, vector<256x128xf32> -> vector<256x128xf32>
    %7 = arith.addf %3, %6 : vector<256x128xf32>
    %c0_6 = arith.constant 0 : index
    %c0_7 = arith.constant 0 : index
    %8 = vector.load %arg9[%c0_6, %c0_7] : memref<256x128xf32, #tpu.memory_space<vmem>>, vector<256x128xf32>
    tpu.vector_store %arg9[%c0_6, %c0_7], %7 {strides = array<i32>} : memref<256x128xf32, #tpu.memory_space<vmem>>, vector<256x128xf32>,
    %c1_i32 = arith.constant 1 : i32
    %9 = arith.cmpi eq, %arg1, %c1_i32 : i32
    %10 = arith.extui %9 : i1 to i32
    %c0_i32_8 = arith.constant 0 : i32
    %11 = arith.cmpi ne, %10, %c0_i32_8 : i32
    scf.if %11 {
      %c0_9 = arith.constant 0 : index
      %c0_10 = arith.constant 0 : index
      %12 = vector.load %arg4[%c0_9, %c0_10] : memref<256x128xbf16, #tpu.memory_space<vmem>>, vector<256x128xbf16>
      %c0_11 = arith.constant 0 : index
      %c0_12 = arith.constant 0 : index
      %13 = vector.load %arg5[%c0_11, %c0_12] : memref<128x128xbf16, #tpu.memory_space<vmem>>, vector<128x128xbf16>
      %cst_13 = arith.constant dense<0.000000e+00> : vector<256x128xf32>
      %14 = tpu.matmul %12, %13, %cst_13 {dimension_numbers = #tpu.dot_dimension_numbers<[1], [0], [0], [1], [0, 0, 1, 1], [], []>} : vector<256x128xbf16>, vector<128x128xbf16>, vector<256x128xf32> -> vector<256x128xf32>
      %c0_14 = arith.constant 0 : index
      %c0_15 = arith.constant 0 : index
      %15 = vector.load %arg9[%c0_14, %c0_15] : memref<256x128xf32, #tpu.memory_space<vmem>>, vector<256x128xf32>
      %16 = arith.truncf %15 : vector<256x128xf32> to vector<256x128xbf16>
      %c0_16 = arith.constant 0 : index
      %c0_17 = arith.constant 0 : index
      %17 = vector.load %arg6[%c0_16, %c0_17] : memref<128x128xbf16, #tpu.memory_space<vmem>>, vector<128x128xbf16>
      %cst_18 = arith.constant dense<0.000000e+00> : vector<256x128xf32>
      %18 = tpu.matmul %16, %17, %cst_18 {dimension_numbers = #tpu.dot_dimension_numbers<[1], [0], [0], [1], [0, 0, 1, 1], [], []>} : vector<256x128xbf16>, vector<128x128xbf16>, vector<256x128xf32> -> vector<256x128xf32>
      %19 = arith.addf %14, %18 : vector<256x128xf32>
      %cst_19 = arith.constant 0.000000e+00 : f32
      %20 = vector.broadcast %cst_19 : f32 to vector<256x128xf32>
      %21 = arith.maximumf %19, %20 : vector<256x128xf32>
      %22 = arith.truncf %21 : vector<256x128xf32> to vector<256x128xbf16>
      %c0_20 = arith.constant 0 : index
      %c0_21 = arith.constant 0 : index
      %23 = vector.load %arg7[%c0_20, %c0_21] : memref<128x128xbf16, #tpu.memory_space<vmem>>, vector<128x128xbf16>
      %cst_22 = arith.constant dense<0.000000e+00> : vector<256x128xf32>
      %24 = tpu.matmul %22, %23, %cst_22 {dimension_numbers = #tpu.dot_dimension_numbers<[1], [0], [0], [1], [0, 0, 1, 1], [], []>} : vector<256x128xbf16>, vector<128x128xbf16>, vector<256x128xf32> -> vector<256x128xf32>
      %c0_23 = arith.constant 0 : index
      %c0_24 = arith.constant 0 : index
      %25 = vector.load %arg8[%c0_23, %c0_24] : memref<256x128xf32, #tpu.memory_space<vmem>>, vector<256x128xf32>
      tpu.vector_store %arg8[%c0_23, %c0_24], %24 {strides = array<i32>} : memref<256x128xf32, #tpu.memory_space<vmem>>, vector<256x128xf32>,
    } else {
    }
    return
  }
  func.func @transform_0(%arg0: i32, %arg1: i32) -> (i32, i32) {
    %c0_i32 = arith.constant 0 : i32
    return %arg0, %arg1 : i32, i32
  }
  func.func @transform_1(%arg0: i32, %arg1: i32) -> (i32, i32) {
    %c0_i32 = arith.constant 0 : i32
    %c0_i32_0 = arith.constant 0 : i32
    return %arg1, %c0_i32 : i32, i32
  }
  func.func @transform_2(%arg0: i32, %arg1: i32) -> (i32, i32) {
    %c0_i32 = arith.constant 0 : i32
    %c0_i32_0 = arith.constant 0 : i32
    return %arg0, %c0_i32 : i32, i32
  }
  func.func @transform_3(%arg0: i32, %arg1: i32) -> (i32, i32) {
    %c0_i32 = arith.constant 0 : i32
    %c0_i32_0 = arith.constant 0 : i32
    %c0_i32_1 = arith.constant 0 : i32
    return %c0_i32, %c0_i32_0 : i32, i32
  }
  func.func @transform_4(%arg0: i32, %arg1: i32) -> (i32, i32) {
    %c0_i32 = arith.constant 0 : i32
    %c0_i32_0 = arith.constant 0 : i32
    %c0_i32_1 = arith.constant 0 : i32
    return %c0_i32, %c0_i32_0 : i32, i32
  }
  func.func @transform_5(%arg0: i32, %arg1: i32) -> (i32, i32) {
    %c0_i32 = arith.constant 0 : i32
    %c0_i32_0 = arith.constant 0 : i32
    %c0_i32_1 = arith.constant 0 : i32
    return %c0_i32, %c0_i32_0 : i32, i32
  }
  func.func @transform_6(%arg0: i32, %arg1: i32) -> (i32, i32) {
    %c0_i32 = arith.constant 0 : i32
    %c0_i32_0 = arith.constant 0 : i32
    return %arg0, %c0_i32 : i32, i32
  }
}

</mosaic_0001>

<bundles_post_ra>
// kernel: tpu_custom_call.1
= control target key start
LH: loop header
LB: loop body
LE: loop exit
PB: predicated region body
PF: predicated region fallthrough
CT: control target
= control target key end

     0   :  { %s3539_s0 = inlined_call_operand.hbm [shape: bf16[512,512], index: 0, kind: input, shape index: {}]   ;;  %s3540_s1 = inlined_call_operand.hbm [shape: bf16[512,128], index: 1, kind: input, shape index: {}]   ;;  %s3541_s2 = inlined_call_operand.hbm [shape: bf16[512,128], index: 2, kind: input, shape index: {}]   ;;  %s3542_s3 = inlined_call_operand.hbm [shape: bf16[128,128], index: 3, kind: input, shape index: {}]   ;;  %s3543_s4 = inlined_call_operand.hbm [shape: bf16[128,128], index: 4, kind: input, shape index: {}]   ;;  %s3544_s5 = inlined_call_operand.hbm [shape: bf16[128,128], index: 5, kind: input, shape index: {}]   ;;  %s3545_s6 = inlined_call_operand.hbm [shape: f32[512,128], index: 6, kind: output, shape index: {}]  }
   0x1   :  { %3558 = sst [smem:[#allocation32_spill]] %s3539_s0 }
   0x2   :  { %3559 = sst [smem:[#allocation33_spill]] %s3540_s1 }
   0x3   :  { %3560 = sst [smem:[#allocation34_spill]] %s3541_s2 }
   0x4   :  { %3561 = sst [smem:[#allocation35_spill]] %s3542_s3 }
   0x5   :  { %3562 = sst [smem:[#allocation36_spill]] %s3543_s4 }
   0x6   :  { %3563 = sst [smem:[#allocation37_spill]] %s3544_s5 }
   0x7   :  { %3564 = sst [smem:[#allocation38_spill]] %s3545_s6 }
   0x8   :  { %11 = vsyncpa [#allocation4], 0 }
   0x9   :  { %13 = vsyncpa [#allocation4 + $0x1], 0 }
   0xa   :  { %14 = vsyncpa [#allocation7], 0 }
   0xb   :  { %16 = vsyncpa [#allocation7 + $0x1], 0 }
   0xc   :  { %17 = vsyncpa [#allocation10], 0 }
   0xd   :  { %18 = vsyncpa [#allocation13], 0 }
   0xe   :  { %19 = vsyncpa [#allocation5], 0 }
   0xf   :  { %21 = vsyncpa [#allocation5 + $0x1], 0  ;;  %s3031_s21 = smov 0   ;;  %s3033_s22 = smov 0  }
  0x10   :  { %s3035_s23 = smov 0   ;;  %s3037_s24 = smov 0  }
  0x11   :  { %s3039_s25 = smov 0   ;;  %s3041_s26 = smov 0  }
  0x12   :  { %s3043_s27 = smov 0   ;;  %s3045_s28 = smov 0  }
  0x13   :  { %s3047_s29 = smov 0   ;;  %s3049_s30 = smov 0  }
  0x14   :  { %s3051_s7 = smov 0   ;;  %s3053_s8 = smov 0  }
  0x15   :  { %s3055_s9 = smov 0   ;;  %s3057_s10 = smov 0  }
  0x16 LB: > { %3565 = sst [smem:[#allocation21_spill]] %s2931_s21  ;;  %s3102_s11 = sadd.s32 4294967295, %s2983_s10   ;;  %s2983_s10 = sphi %s3057_s10, %s27_s10   ;;  %s2979_s9 = sphi %s3055_s9, %s3610_s9   ;;  %s2975_s8 = sphi %s3053_s8, %s3609_s8   ;;  %s2971_s7 = sphi %s3051_s7, %s3608_s7   ;;  %s2967_s30 = sphi %s3049_s30, %s3607_s30   ;;  %s2963_s29 = sphi %s3047_s29, %s3606_s29   ;;  %s2959_s28 = sphi %s3045_s28, %s3617_s28   ;;  %s2955_s27 = sphi %s3043_s27, %s3616_s27   ;;  %s2951_s26 = sphi %s3041_s26, %s3615_s26   ;;  %s2947_s25 = sphi %s3039_s25, %s3614_s25   ;;  %s2943_s24 = sphi %s3037_s24, %s3604_s24   ;;  %s2939_s23 = sphi %s3035_s23, %s3613_s23   ;;  %s2935_s22 = sphi %s3033_s22, %s3612_s22   ;;  %s2931_s21 = sphi %s3031_s21, %s3611_s21  }
  0x17   : > { %3566 = sst [smem:[#allocation22_spill]] %s2947_s25  ;;  %p1951_p0 = scmp.ge.s32.totalorder %s2983_s10, 1 }
  0x18   : > { %3567 = sst [smem:[#allocation23_spill]] %s2963_s29  ;;  %p62_p1 = scmp.eq.s32.totalorder %s3102_s11, 0 }
  0x19   : > { %3568 = sst [smem:[#allocation24_spill]] %s2967_s30  ;;  %p200_p2 = scmp.eq.s32.totalorder %s3102_s11, 3 }
  0x1a   : > { %3569 = sst [smem:[#allocation25_spill]] %s2971_s7  ;;  %p213_p3 = scmp.lt.s32.totalorder %s2983_s10, 5 }
  0x1b   : > { %3570 = sst [smem:[#allocation26_spill]] %s2975_s8  ;;  %s2985_s16 = smov [#allocation9]  }
  0x1c   : > { %3571 = sst [smem:[#allocation27_spill]] %s2979_s9  ;;  %p3111_p4 = pnand %p1951_p0, %p213_p3 }
  0x1d   : > { %s3572_s3 = sld [smem:[#allocation35_spill]]  ;;  %s226_s17 = sshll.u32 %s2985_s16, 4  ;;  %s227_s17 = int_to_ptr.vmem [resolvable:$true] %s226_s17 }
  0x1e   : > { %s3573_s15 = scalar_select %p3111_p4, 1, 0 }
  0x1f   : > { %p2486_p5 = pneg %p3111_p4  ;;  %s3546_s19 = smov 64  }
  0x20   : > { %3574 = sst [smem:[#allocation28_spill]] %s3573_s15  ;;  %s3548_s20 = smov 4  }
  0x21   : > { %p3119_p6 = pnand %p2486_p5, %p62_p1  ;;  %s36_s12 = sadd.s32 1, %s2975_s8 }
  0x22   : > { %p56_p7 = scmp.eq.s32.totalorder %s2983_s10, 0  ;;  %p3130_p8 = scmp.ge.s32.totalorder %s36_s12, 2 }
  0x23   : > { %s224_s14 = sshll.u32 %s3572_s3, 4  ;;  %s74_s16 = sadd.s32 1, %s2951_s26  ;;  %s225_s14 = int_to_ptr.hbm [resolvable:$true] %s224_s14 }
  0x24   : > { %2489 = dma.hbm_to_vmem [thread:$0]  (!%p3119_p6), %s225_s14, 1024, %s227_s17, [#allocation10], %s3546_s19, %s3546_s19, %s3548_s20  }
  0x25   : > { %p81_p9 = scmp.ne.s32.totalorder %s2951_s26, %s2947_s25  ;;  %p87_p10 = scmp.ne.s32.totalorder %s2947_s25, %s2943_s24 }
  0x26   : > { %s3619_s12 = smov (%p3130_p8, %s36_s12), 0  ;;  %p2513_p13 = scmp.lt.s32.totalorder %s2983_s10, 4 }
  0x27   : > { %3577 = sst [smem:[#allocation29_spill]] %s3619_s12  ;;  %p3145_p11 = por %p81_p9, %p56_p7 }
  0x28   : > { %p3151_p12 = por %p87_p10, %p62_p1  ;;  %s3157_s17 = ssub.s32 %s2975_s8, %s3619_s12 }
  0x29   : > { %p72_p0 = scmp.eq.s32.totalorder %s3157_s17, 0  ;;  %s293_s24 = sand.u32 1, %s2983_s10  }
  0x2a   : > { %s295_s19 = sand.u32 1, %s2951_s26   ;;  %s2335_s7 = sshll.u32 %s2975_s8, 7 }
  0x2b   : > { %s3164_s20 = scalar_select %p72_p0, %s2951_s26, %s74_s16  }
  0x2c   : > { %s1961_s6 = sshll.u32 %s295_s19, 7  ;;  %s3580_s1 = sld [smem:[#allocation33_spill]] }
  0x2d   : > { %s297_s0 = scalar_lea.vmem [#allocation6], %s1961_s6  ;;  %p2500_p3 = pnand %p2513_p13, %p3145_p11 }
  0x2e   : > { %s305_s21 = sshll.u32 %s297_s0, 4  ;;  %s3581_s4 = sld [smem:[#allocation36_spill]]  ;;  %s306_s21 = int_to_ptr.vmem [resolvable:$true] %s305_s21 }
  0x2f   : > { %s2988_s25 = smov [#allocation11]   ;;  %s3177_s6 = scalar_lea.sflag [#allocation7], %s293_s24 }
  0x30   : > { %s240_s0 = sshll.u32 %s2988_s25, 4  ;;  %s3582_s3 = smov 4   ;;  %s241_s0 = int_to_ptr.vmem [resolvable:$true] %s240_s0 }
  0x31   : > { %s3583_s30 = smov 64   ;;  %s3584_s5 = sld [smem:[#allocation37_spill]] }
  0x32   : > { %s302_s15 = scalar_lea.hbm %s3580_s1, %s2335_s7  ;;  %s2989_s24 = smov [#allocation12]  }
  0x33   : > { %s303_s2 = sshll.u32 %s302_s15, 4  ;;  %s254_s16 = sshll.u32 %s2989_s24, 4  ;;  %s304_s2 = int_to_ptr.hbm [resolvable:$true] %s303_s2  ;;  %s255_s16 = int_to_ptr.vmem [resolvable:$true] %s254_s16 }
  0x34   : > { %s238_s19 = sshll.u32 %s3581_s4, 4  ;;  %p55_p5 = scmp.ne.s32.totalorder %s2963_s29, %s2959_s28  ;;  %s239_s19 = int_to_ptr.hbm [resolvable:$true] %s238_s19 }
  0x35   : > { %2502 = dma.hbm_to_vmem [thread:$0]  (!%p2500_p3), %s304_s2, 2048, %s306_s21, %s3177_s6, %s3583_s30, %s3583_s30, %s3582_s3  }
  0x36   : > { %2492 = dma.hbm_to_vmem [thread:$0]  (!%p3119_p6), %s239_s19, 1024, %s241_s0, [#allocation10], %s3583_s30, %s3583_s30, %s3582_s3  }
  0x37   : > { %s252_s12 = sshll.u32 %s3584_s5, 4  ;;  %s39_s2 = sadd.s32 1, %s2979_s9  ;;  %s253_s12 = int_to_ptr.hbm [resolvable:$true] %s252_s12 }
  0x38   : > { %2495 = dma.hbm_to_vmem [thread:$0]  (!%p3119_p6), %s253_s12, 1024, %s255_s16, [#allocation13], %s3583_s30, %s3583_s30, %s3582_s3  }
  0x39   : > { %s48_s21 = sadd.s32 1, %s2963_s29  ;;  %s3621_s2 = smov (!%p3130_p8, %s39_s2), %s2979_s9 }
  0x3a   : > { %p61_p9 = scmp.ne.s32.totalorder %s2959_s28, %s2955_s27  ;;  %p41_p10 = scmp.ge.s32.totalorder %s3621_s2, 2 }
  0x3b   : > { %s268_s19 = sand.u32 1, %s2963_s29   ;;  %p3208_p11 = por %p56_p7, %p55_p5 }
  0x3c   : > { %p3214_p6 = por %p62_p1, %p61_p9  ;;  %s3623_s2 = smov (%p41_p10, %s3621_s2), 0 }
  0x3d   : > { %3587 = sst [smem:[#allocation30_spill]] %s3623_s2  ;;  %s1956_s13 = sshll.u32 %s268_s19, 8 }
  0x3e   : > { %s43_s0 = ssub.s32 %s2979_s9, %s3623_s2  ;;  %s1958_s7 = sshll.u32 %s2975_s8, 1 }
  0x3f   : > { %s45_s27 = sor.u32 %s3157_s17, %s43_s0  ;;  %p98_p8 = scmp.eq.s32.totalorder %s43_s0, 0 }
  0x40   : > { %p46_p0 = scmp.eq.s32.totalorder %s45_s27, 0  ;;  %s2334_s15 = sshll.u32 %s2979_s9, 7 }
  0x41   : > { %s272_s12 = scalar_lea.vmem [#allocation3], %s1956_s13  ;;  %s278_s1 = sadd.s32 %s2334_s15, %s1958_s7 }
  0x42   : > { %s283_s24 = sshll.u32 %s272_s12, 4  ;;  %s3589_s4 = sld [smem:[#allocation21_spill]]  ;;  %s284_s24 = int_to_ptr.vmem [resolvable:$true] %s283_s24 }
  0x43   : > { %s3226_s16 = scalar_select %p46_p0, %s2963_s29, %s48_s21  }
  0x44   : > { %s1960_s5 = sshll.u32 %s278_s1, 2  ;;  %p2497_p3 = pnand %p2513_p13, %p3208_p11 }
  0x45   : > { %3588 = sst [smem:[#allocation31_spill]] %s3226_s16  ;;  %s269_s21 = scalar_lea.sflag [#allocation4], %s268_s19 }
  0x46   : > { %s3590_s13 = sld [smem:[#allocation32_spill]]  ;;  %s2990_s9 = smov 256  }
  0x47   : > { %s2991_s7 = smov 128   ;;  %s2992_s8 = smov 8  }
  0x48   : > { %s1950_s16 = sadd.s32 4294967294, %s2983_s10   ;;  %s100_s29 = sadd.s32 1, %s2939_s23 }
  0x49   : > { %p107_p5 = scmp.ne.s32.totalorder %s2939_s23, %s2935_s22  ;;  %p113_p10 = scmp.ne.s32.totalorder %s2935_s22, %s3589_s4 }
  0x4a   : > { %s3241_s1 = scalar_select %p98_p8, %s2939_s23, %s100_s29  }
  0x4b   : > { %p3245_p9 = por %p107_p5, %p56_p7  ;;  %p3253_p11 = por %p200_p2, %p107_p5 }
  0x4c   : > { %s280_s2 = scalar_lea.hbm %s3590_s13, %s1960_s5  ;;  %p206_p0 = scmp.eq.s32.totalorder %s1950_s16, 3 }
  0x4d   : > { %s281_s12 = sshll.u32 %s280_s2, 4  ;;  %s317_s29 = sand.u32 1, %s2939_s23   ;;  %s282_s12 = int_to_ptr.hbm [resolvable:$true] %s281_s12 }
  0x4e   : > { %2499 = dma.hbm_to_vmem [thread:$0]  (!%p2497_p3), %s282_s12, 4096, %s284_s24, %s269_s21, %s2990_s9, %s2991_s7, %s2992_s8  }
  0x4f   : > { %p3259_p3 = por %p113_p10, %p62_p1  ;;  %p3264_p8 = por %p206_p0, %p113_p10 }
  0x50   : > { %s1964_s19 = sshll.u32 %s317_s29, 7  ;;  %s3595_s4 = sld [smem:[#allocation34_spill]] }
  0x51   : > { %s319_s27 = scalar_lea.vmem [#allocation8], %s1964_s19  ;;  %p2503_p2 = pnand %p2513_p13, %p3245_p9 }
  0x52   : > { %s327_s13 = sshll.u32 %s319_s27, 4  ;;  %s341_s12 = sand.u32 (!%p3111_p4), 1, %s2959_s28   ;;  %s328_s13 = int_to_ptr.vmem [resolvable:$true] %s327_s13 }
  0x53   : > { %s1968_s21 = sshll.u32 (!%p3111_p4), %s341_s12, 8 }
  0x54   : > { %339 = sbr.rel (%p3111_p4) target bundleno = 956 (0x3bc), region = 44  ;;  %s3282_s7 = scalar_lea.vmem (!%p3111_p4), [#allocation3], %s1968_s21 }
  0x56   : > { %s324_s24 = scalar_lea.hbm %s3595_s4, %s2334_s15  ;;  %s342_s15 = scalar_lea.sflag (!%p3111_p4), [#allocation4], %s341_s12 }
  0x57   : > { %s325_s17 = sshll.u32 %s324_s24, 4  ;;  %s326_s17 = int_to_ptr.hbm [resolvable:$true] %s325_s17 }
  0x58   : > { %2505 = dma.hbm_to_vmem [thread:$0]  (!%p2503_p2), %s326_s17, 2048, %s328_s13, %s3177_s6, %s3583_s30, %s3583_s30, %s3582_s3  }
  0x59   : > { %2906 = dma.done.wait (%p3214_p6), %s342_s15, 4096  }
  0x5a   : > { %2908 = vsyncadd (%p3214_p6), %s342_s15, 4294963200  ;;  %s3597_s5 = sld [smem:[#allocation22_spill]]  ;;  %s351_s29 = sand.u32 1, %s3102_s11  }
  0x5b   : > { %s352_s30 = scalar_lea.sflag [#allocation7], %s351_s29 }
  0x60   : > { %s353_s6 = sand.u32 1, %s3597_s5  }
  0x61   : > { %s1969_s3 = sshll.u32 %s353_s6, 7 }
  0x62   : > { %s3290_s19 = scalar_lea.vmem [#allocation6], %s1969_s3 }
  0x63   : > { %2910 = dma.done.wait (%p3151_p12), %s352_s30, 2048  }
  0x64   : > { %2912 = vsyncadd (%p3151_p12), %s352_s30, 4294965248  ;;  %s3297_s25 = sand.u32 1, %s2935_s22  }
  0x65   : > { %s1970_s18 = sshll.u32 %s3297_s25, 7 }
  0x66   : > { %s3300_s0 = scalar_lea.vmem [#allocation8], %s1970_s18 }
  0x67   : > { %2914 = dma.done.wait (%p3259_p3), %s352_s30, 2048  }
  0x68   : > { %2916 = vsyncadd (%p3259_p3), %s352_s30, 4294965248 }
  0x69   : > { %2918 = dma.done.wait (%p62_p1), [#allocation10], 2048  }
  0x6a   : > { %2920 = vsyncadd (%p62_p1), [#allocation10], 4294965248 }
  0x6b   : > { %2922 = dma.done.wait (%p62_p1), [#allocation13], 1024  }
  0x6c   : > { %2924 = vsyncadd (%p62_p1), [#allocation13], 4294966272  ;;  %s1974_s14 = sshll.u32 %s3297_s25, 8  ;;  %s3598_s24 = sld [smem:[#allocation24_spill]] }
  0x6d   : > { %s3315_s4 = scalar_lea.vmem [#allocation14], %s1974_s14 }
  0x72   : > { %p1975_p4 = scmp.ne.s32.totalorder %s3598_s24, 0 }
  0x74   : > { %428 = sbr.rel (%p1975_p4) target bundleno = 154 (0x9a), region = 72 }
  0x79   : > { %v2993_v0 = vmov 0.0  }
  0x7a   : > { %429 = vst [vmem:[#allocation2 + $0xb0] sm:$0xff] %v2993_v0 }
  0x7b   : > { %430 = vst [vmem:[#allocation2] sm:$0xff] %v2993_v0 }
  0x7c   : > { %431 = vst [vmem:[#allocation2 + $0xd8] sm:$0xff] %v2993_v0 }
  0x7d   : > { %432 = vst [vmem:[#allocation2 + $0x18] sm:$0xff] %v2993_v0 }
  0x7e   : > { %433 = vst [vmem:[#allocation2 + $0x50] sm:$0xff] %v2993_v0 }
  0x7f   : > { %434 = vst [vmem:[#allocation2 + $0x68] sm:$0xff] %v2993_v0 }
  0x80   : > { %435 = vst [vmem:[#allocation2 + $0x30] sm:$0xff] %v2993_v0 }
  0x81   : > { %436 = vst [vmem:[#allocation2 + $0x48] sm:$0xff] %v2993_v0 }
  0x82   : > { %437 = vst [vmem:[#allocation2 + $0x80] sm:$0xff] %v2993_v0 }
  0x83   : > { %438 = vst [vmem:[#allocation2 + $0x88] sm:$0xff] %v2993_v0 }
  0x84   : > { %439 = vst [vmem:[#allocation2 + $0xe8] sm:$0xff] %v2993_v0 }
  0x85   : > { %440 = vst [vmem:[#allocation2 + $0xb8] sm:$0xff] %v2993_v0 }
  0x86   : > { %441 = vst [vmem:[#allocation2 + $0x60] sm:$0xff] %v2993_v0 }
  0x87   : > { %442 = vst [vmem:[#allocation2 + $0xf0] sm:$0xff] %v2993_v0 }
  0x88   : > { %443 = vst [vmem:[#allocation2 + $0x8] sm:$0xff] %v2993_v0 }
  0x89   : > { %444 = vst [vmem:[#allocation2 + $0x78] sm:$0xff] %v2993_v0 }
  0x8a   : > { %445 = vst [vmem:[#allocation2 + $0x38] sm:$0xff] %v2993_v0 }
  0x8b   : > { %446 = vst [vmem:[#allocation2 + $0x58] sm:$0xff] %v2993_v0 }
  0x8c   : > { %447 = vst [vmem:[#allocation2 + $0x40] sm:$0xff] %v2993_v0 }
  0x8d   : > { %448 = vst [vmem:[#allocation2 + $0xc8] sm:$0xff] %v2993_v0 }
  0x8e   : > { %449 = vst [vmem:[#allocation2 + $0xe0] sm:$0xff] %v2993_v0 }
  0x8f   : > { %450 = vst [vmem:[#allocation2 + $0x90] sm:$0xff] %v2993_v0 }
  0x90   : > { %451 = vst [vmem:[#allocation2 + $0x70] sm:$0xff] %v2993_v0 }
  0x91   : > { %452 = vst [vmem:[#allocation2 + $0xc0] sm:$0xff] %v2993_v0 }
  0x92   : > { %453 = vst [vmem:[#allocation2 + $0xa8] sm:$0xff] %v2993_v0 }
  0x93   : > { %454 = vst [vmem:[#allocation2 + $0xd0] sm:$0xff] %v2993_v0 }
  0x94   : > { %455 = vst [vmem:[#allocation2 + $0x10] sm:$0xff] %v2993_v0 }
  0x95   : > { %456 = vst [vmem:[#allocation2 + $0x28] sm:$0xff] %v2993_v0 }
  0x96   : > { %457 = vst [vmem:[#allocation2 + $0xa0] sm:$0xff] %v2993_v0 }
  0x97   : > { %458 = vst [vmem:[#allocation2 + $0xf8] sm:$0xff] %v2993_v0 }
  0x98   : > { %459 = vst [vmem:[#allocation2 + $0x20] sm:$0xff] %v2993_v0 }
  0x99   : > { %460 = vst [vmem:[#allocation2 + $0x98] sm:$0xff] %v2993_v0 }
  0x9a PF: > { %v2376_v1 = vld [vmem:[%s3290_s19 + $0x38] sm:$0xff]  ;;  %v2375_v3 = vld [vmem:[%s3290_s19 + $0x30] sm:$0xff]  ;;  %v2374_v5 = vld [vmem:[%s3290_s19 + $0x28] sm:$0xff]  ;;  %s3599_s11 = sld [smem:[#allocation24_spill]] }
  0x9b   : > { %v2384_v2 = vld [vmem:[%s3290_s19 + $0x78] sm:$0xff]  ;;  %813 = vmatpush.bf16.msra.mxu0 %v2376_v1  ;;  %2426 = vmatpush.bf16.msra.mxu2 %v2376_v1  ;;  %v2383_v4 = vld [vmem:[%s3290_s19 + $0x70] sm:$0xff]  ;;  %v2382_v6 = vld [vmem:[%s3290_s19 + $0x68] sm:$0xff] }
  0x9c   : > { %902 = vmatpush.bf16.msra.mxu1 %v2384_v2  ;;  %2434 = vmatpush.bf16.msra.mxu3 %v2384_v2  ;;  %v2373_v7 = vld [vmem:[%s3290_s19 + $0x20] sm:$0xff]  ;;  %v2372_v9 = vld [vmem:[%s3290_s19 + $0x18] sm:$0xff]  ;;  %v2371_v11 = vld [vmem:[%s3290_s19 + $0x10] sm:$0xff] }
  0x9d   : > { %v2381_v8 = vld [vmem:[%s3290_s19 + $0x60] sm:$0xff]  ;;  %v2380_v10 = vld [vmem:[%s3290_s19 + $0x58] sm:$0xff]  ;;  %v2379_v12 = vld [vmem:[%s3290_s19 + $0x50] sm:$0xff] }
  0x9e   : > { %v2370_v13 = vld [vmem:[%s3290_s19 + $0x8] sm:$0xff]  ;;  %v2369_v15 = vld [vmem:[%s3290_s19] sm:$0xff]  ;;  %v1986_v29 = vld [vmem:[%s3282_s7 + $0x10] sm:$0xf] }
  0x9f   : > { %814 = vmatpush.bf16.msra.mxu0 %v2375_v3  ;;  %2427 = vmatpush.bf16.msra.mxu2 %v2375_v3  ;;  %v2378_v14 = vld [vmem:[%s3290_s19 + $0x48] sm:$0xff]  ;;  %v2377_v16 = vld [vmem:[%s3290_s19 + $0x40] sm:$0xff]  ;;  %v2340_v30 = vld [vmem:[%s3282_s7 + $0x14] sm:$0xf0] }
  0xa0   : > { %903 = vmatpush.bf16.msra.mxu1 %v2383_v4  ;;  %2435 = vmatpush.bf16.msra.mxu3 %v2383_v4  ;;  %v1978_v17 = vld [vmem:[%s3282_s7] sm:$0xf]  ;;  %v2338_v18 = vld [vmem:[%s3282_s7 + $0x4] sm:$0xf0]  ;;  %v2337_v21 = vld [vmem:[%s3282_s7 + $0x4] sm:$0xf]  ;;  %v1987_v37 = vor.u32 %v2340_v30, %v1986_v29 }
  0xa1   : > { %v2042_v19 = vld [vmem:[%s3282_s7 + $0x80] sm:$0xf]  ;;  %v2354_v20 = vld [vmem:[%s3282_s7 + $0x84] sm:$0xf0]  ;;  %v1980_v22 = vld [vmem:[%s3282_s7 + $0x8] sm:$0xf0]  ;;  %v1979_v25 = vor.u32 %v2338_v18, %v1978_v17 }
  0xa2   : > { %v2353_v23 = vld [vmem:[%s3282_s7 + $0x84] sm:$0xf]  ;;  %v2044_v24 = vld [vmem:[%s3282_s7 + $0x88] sm:$0xf0]  ;;  %v2043_v26 = vor.u32 %v2354_v20, %v2042_v19  ;;  %v1983_v27 = vor.u32 %v2337_v21, %v1980_v22  ;;  %v2050_v31 = vld [vmem:[%s3282_s7 + $0x90] sm:$0xf] }
  0xa3   : > { %815 = vmatpush.bf16.msra.mxu0 %v2374_v5  ;;  %2428 = vmatpush.bf16.msra.mxu2 %v2374_v5  ;;  %v2047_v28 = vor.u32 %v2353_v23, %v2044_v24  ;;  %v2356_v32 = vld [vmem:[%s3282_s7 + $0x94] sm:$0xf0]  ;;  %v2339_v33 = vld [vmem:[%s3282_s7 + $0x14] sm:$0xf]  ;;  %v1988_v34 = vld [vmem:[%s3282_s7 + $0x18] sm:$0xf0] }
  0xa4   : > { %904 = vmatpush.bf16.msra.mxu1 %v2382_v6  ;;  %2436 = vmatpush.bf16.msra.mxu3 %v2382_v6  ;;  %v2355_v35 = vld [vmem:[%s3282_s7 + $0x94] sm:$0xf]  ;;  %v2052_v36 = vld [vmem:[%s3282_s7 + $0x98] sm:$0xf0]  ;;  %v2051_v38 = vor.u32 %v2356_v32, %v2050_v31  ;;  %v1991_v39 = vor.u32 %v2339_v33, %v1988_v34  ;;  %v1994_v41 = vld [vmem:[%s3282_s7 + $0x20] sm:$0xf] }
  0xa5   : > { %v2055_v40 = vor.u32 %v2355_v35, %v2052_v36  ;;  %v2342_v42 = vld [vmem:[%s3282_s7 + $0x24] sm:$0xf0]  ;;  %v2058_v43 = vld [vmem:[%s3282_s7 + $0xa0] sm:$0xf]  ;;  %v2341_v45 = vld [vmem:[%s3282_s7 + $0x24] sm:$0xf] }
  0xa6   : > { %v2358_v44 = vld [vmem:[%s3282_s7 + $0xa4] sm:$0xf0]  ;;  %v1996_v46 = vld [vmem:[%s3282_s7 + $0x28] sm:$0xf0]  ;;  %v2357_v47 = vld [vmem:[%s3282_s7 + $0xa4] sm:$0xf]  ;;  %v1995_v49 = vor.u32 %v2342_v42, %v1994_v41 }
  0xa7   : > { %816 = vmatpush.bf16.msra.mxu0 %v2373_v7  ;;  %2429 = vmatpush.bf16.msra.mxu2 %v2373_v7  ;;  %v2060_v48 = vld [vmem:[%s3282_s7 + $0xa8] sm:$0xf0]  ;;  %v2059_v50 = vor.u32 %v2358_v44, %v2058_v43  ;;  %v1999_v51 = vor.u32 %v2341_v45, %v1996_v46  ;;  %v2002_v53 = vld [vmem:[%s3282_s7 + $0x30] sm:$0xf]  ;;  %v2344_v54 = vld [vmem:[%s3282_s7 + $0x34] sm:$0xf0] }
  0xa8   : > { %905 = vmatpush.bf16.msra.mxu1 %v2381_v8  ;;  %2437 = vmatpush.bf16.msra.mxu3 %v2381_v8  ;;  %v2063_v52 = vor.u32 %v2357_v47, %v2060_v48  ;;  %v2066_v55 = vld [vmem:[%s3282_s7 + $0xb0] sm:$0xf]  ;;  %v2360_v56 = vld [vmem:[%s3282_s7 + $0xb4] sm:$0xf0]  ;;  %v2343_v57 = vld [vmem:[%s3282_s7 + $0x34] sm:$0xf]  ;;  %v2003_v61 = vor.u32 %v2344_v54, %v2002_v53 }
  0xa9   : > { %v2004_v58 = vld [vmem:[%s3282_s7 + $0x38] sm:$0xf0]  ;;  %v2359_v59 = vld [vmem:[%s3282_s7 + $0xb4] sm:$0xf]  ;;  %v2067_v62 = vor.u32 %v2360_v56, %v2066_v55  ;;  %v2010_v1 = vld [vmem:[%s3282_s7 + $0x40] sm:$0xf] }
  0xaa   : > { %v2068_v60 = vld [vmem:[%s3282_s7 + $0xb8] sm:$0xf0]  ;;  %v2007_v63 = vor.u32 %v2343_v57, %v2004_v58  ;;  %v2346_v2 = vld [vmem:[%s3282_s7 + $0x44] sm:$0xf0]  ;;  %v2074_v3 = vld [vmem:[%s3282_s7 + $0xc0] sm:$0xf] }
  0xab   : > { %817 = vmatpush.bf16.msra.mxu0 %v2372_v9  ;;  %2430 = vmatpush.bf16.msra.mxu2 %v2372_v9  ;;  %v2071_v0 = vor.u32 %v2359_v59, %v2068_v60  ;;  %v2362_v4 = vld [vmem:[%s3282_s7 + $0xc4] sm:$0xf0]  ;;  %v2345_v5 = vld [vmem:[%s3282_s7 + $0x44] sm:$0xf]  ;;  %v2012_v6 = vld [vmem:[%s3282_s7 + $0x48] sm:$0xf0]  ;;  %v2011_v9 = vor.u32 %v2346_v2, %v2010_v1 }
  0xac   : > { %906 = vmatpush.bf16.msra.mxu1 %v2380_v10  ;;  %2438 = vmatpush.bf16.msra.mxu3 %v2380_v10  ;;  %v2361_v7 = vld [vmem:[%s3282_s7 + $0xc4] sm:$0xf]  ;;  %v2076_v8 = vld [vmem:[%s3282_s7 + $0xc8] sm:$0xf0]  ;;  %v2075_v10 = vor.u32 %v2362_v4, %v2074_v3  ;;  %v2347_v17 = vld [vmem:[%s3282_s7 + $0x54] sm:$0xf] }
  0xad   : > { %v2020_v18 = vld [vmem:[%s3282_s7 + $0x58] sm:$0xf0]  ;;  %v2363_v19 = vld [vmem:[%s3282_s7 + $0xd4] sm:$0xf]  ;;  %v2349_v29 = vld [vmem:[%s3282_s7 + $0x64] sm:$0xf] }
  0xae   : > { %v2084_v20 = vld [vmem:[%s3282_s7 + $0xd8] sm:$0xf0]  ;;  %v2023_v23 = vor.u32 %v2347_v17, %v2020_v18  ;;  %v2028_v30 = vld [vmem:[%s3282_s7 + $0x68] sm:$0xf0]  ;;  %v2365_v31 = vld [vmem:[%s3282_s7 + $0xe4] sm:$0xf] }
  0xaf   : > { %818 = vmatpush.bf16.msra.mxu0 %v2371_v11  ;;  %2431 = vmatpush.bf16.msra.mxu2 %v2371_v11  ;;  %v2015_v11 = vor.u32 %v2345_v5, %v2012_v6  ;;  %v2087_v24 = vor.u32 %v2363_v19, %v2084_v20  ;;  %v2092_v32 = vld [vmem:[%s3282_s7 + $0xe8] sm:$0xf0]  ;;  %v2031_v35 = vor.u32 %v2349_v29, %v2028_v30  ;;  %v2351_v41 = vld [vmem:[%s3282_s7 + $0x74] sm:$0xf]  ;;  %v2036_v42 = vld [vmem:[%s3282_s7 + $0x78] sm:$0xf0] }
  0xb0   : > { %907 = vmatpush.bf16.msra.mxu1 %v2379_v12  ;;  %2439 = vmatpush.bf16.msra.mxu3 %v2379_v12  ;;  %v2079_v12 = vor.u32 %v2361_v7, %v2076_v8  ;;  %v2095_v36 = vor.u32 %v2365_v31, %v2092_v32  ;;  %v2367_v43 = vld [vmem:[%s3282_s7 + $0xf4] sm:$0xf]  ;;  %v2100_v44 = vld [vmem:[%s3282_s7 + $0xf8] sm:$0xf0]  ;;  %v2039_v47 = vor.u32 %v2351_v41, %v2036_v42  ;;  %v462_v59 = vld [vmem:[#allocation2] sm:$0xff]  ;;  %p2168_p1 = scmp.ne.s32.totalorder %s3599_s11, 1 }
  0xb1   : > { %v2103_v48 = vor.u32 %v2367_v43, %v2100_v44  ;;  %v477_v55 = vld [vmem:[#allocation2 + $0x38] sm:$0xff]  ;;  %v481_v31 = vld [vmem:[#allocation2 + $0xe0] sm:$0xff]  ;;  %v482_v41 = vld [vmem:[#allocation2 + $0x90] sm:$0xff] }
  0xb2   : > { %v478_v1 = vld [vmem:[#allocation2 + $0x58] sm:$0xff] }
  0xb3   : > { %819 = vmatpush.bf16.msra.mxu0 %v2370_v13  ;;  %2432 = vmatpush.bf16.msra.mxu2 %v2370_v13  ;;  %v2018_v13 = vld [vmem:[%s3282_s7 + $0x50] sm:$0xf]  ;;  %v463_v5 = vld [vmem:[#allocation2 + $0xd8] sm:$0xff] }
  0xb4   : > { %908 = vmatpush.bf16.msra.mxu1 %v2378_v14  ;;  %2440 = vmatpush.bf16.msra.mxu3 %v2378_v14  ;;  %v2348_v14 = vld [vmem:[%s3282_s7 + $0x54] sm:$0xf0] }
  0xb5   : > { %v2019_v21 = vor.u32 %v2348_v14, %v2018_v13 }
  0xb7   : > { %820 = vmatpush.bf16.msra.mxu0 %v2369_v15  ;;  %2433 = vmatpush.bf16.msra.mxu2 %v2369_v15  ;;  %v2082_v15 = vld [vmem:[%s3282_s7 + $0xd0] sm:$0xf] }
  0xb8   : > { %909 = vmatpush.bf16.msra.mxu1 %v2377_v16  ;;  %2441 = vmatpush.bf16.msra.mxu3 %v2377_v16  ;;  %v2364_v16 = vld [vmem:[%s3282_s7 + $0xd4] sm:$0xf0] }
  0xb9   : > { %v2083_v22 = vor.u32 %v2364_v16, %v2082_v15  ;;  %v464_v15 = vld [vmem:[#allocation2 + $0x18] sm:$0xff] }
  0xba   : > { %821 = vmatmul.bf16.vlgmr.msra.gmra.mxu0 %v1979_v25  ;;  %861 = vmatmul.bf16.vlgmr.msra.gmra.mxu2 %v2043_v26  ;;  %v2026_v25 = vld [vmem:[%s3282_s7 + $0x60] sm:$0xf]  ;;  %v2350_v26 = vld [vmem:[%s3282_s7 + $0x64] sm:$0xf0] }
  0xbb   : > { %910 = vmatmul.bf16.vlgmr.msra.gmra.mxu1 %v1983_v27  ;;  %950 = vmatmul.bf16.vlgmr.msra.gmra.mxu3 %v2047_v28  ;;  %v2090_v27 = vld [vmem:[%s3282_s7 + $0xe0] sm:$0xf]  ;;  %v2366_v28 = vld [vmem:[%s3282_s7 + $0xe4] sm:$0xf0]  ;;  %v2027_v33 = vor.u32 %v2350_v26, %v2026_v25  ;;  %v465_v25 = vld [vmem:[#allocation2 + $0x50] sm:$0xff] }
  0xbc   : > { %v2091_v34 = vor.u32 %v2366_v28, %v2090_v27 }
  0xca   : > { %826 = vmatmul.bf16.gmra.mxu0 %v1987_v37  ;;  %866 = vmatmul.bf16.gmra.mxu2 %v2051_v38  ;;  %v2034_v37 = vld [vmem:[%s3282_s7 + $0x70] sm:$0xf]  ;;  %v2352_v38 = vld [vmem:[%s3282_s7 + $0x74] sm:$0xf0] }
  0xcb   : > { %915 = vmatmul.bf16.gmra.mxu1 %v1991_v39  ;;  %955 = vmatmul.bf16.gmra.mxu3 %v2055_v40  ;;  %v2098_v39 = vld [vmem:[%s3282_s7 + $0xf0] sm:$0xf]  ;;  %v2368_v40 = vld [vmem:[%s3282_s7 + $0xf4] sm:$0xf0]  ;;  %v2035_v45 = vor.u32 %v2352_v38, %v2034_v37 }
  0xcc   : > { %v2099_v46 = vor.u32 %v2368_v40, %v2098_v39 }
  0xda   : > { %831 = vmatmul.bf16.gmra.mxu0 %v1995_v49  ;;  %871 = vmatmul.bf16.gmra.mxu2 %v2059_v50  ;;  %v461_v50 = vld [vmem:[#allocation2 + $0xb0] sm:$0xff] }
  0xdb   : > { %920 = vmatmul.bf16.gmra.mxu1 %v1999_v51  ;;  %960 = vmatmul.bf16.gmra.mxu3 %v2063_v52 }
  0xea   : > { %836 = vmatmul.bf16.gmra.mxu0 %v2003_v61  ;;  %876 = vmatmul.bf16.gmra.mxu2 %v2067_v62 }
  0xeb   : > { %925 = vmatmul.bf16.gmra.mxu1 %v2007_v63  ;;  %965 = vmatmul.bf16.gmra.mxu3 %v2071_v0 }
  0xfa   : > { %841 = vmatmul.bf16.gmra.mxu0 %v2011_v9  ;;  %881 = vmatmul.bf16.gmra.mxu2 %v2075_v10 }
  0xfb   : > { %930 = vmatmul.bf16.gmra.mxu1 %v2015_v11  ;;  %970 = vmatmul.bf16.gmra.mxu3 %v2079_v12  ;;  %v479_v11 = vld [vmem:[#allocation2 + $0x40] sm:$0xff] }
 0x10a   : > { %846 = vmatmul.bf16.gmra.mxu0 %v2019_v21  ;;  %886 = vmatmul.bf16.gmra.mxu2 %v2083_v22  ;;  %v480_v21 = vld [vmem:[#allocation2 + $0xc8] sm:$0xff] }
 0x10b   : > { %935 = vmatmul.bf16.gmra.mxu1 %v2023_v23  ;;  %975 = vmatmul.bf16.gmra.mxu3 %v2087_v24 }
 0x11a   : > { %851 = vmatmul.bf16.gmra.mxu0 %v2027_v33  ;;  %891 = vmatmul.bf16.gmra.mxu2 %v2091_v34 }
 0x11b   : > { %940 = vmatmul.bf16.gmra.mxu1 %v2031_v35  ;;  %980 = vmatmul.bf16.gmra.mxu3 %v2095_v36  ;;  %v466_v35 = vld [vmem:[#allocation2 + $0x68] sm:$0xff] }
 0x12a   : > { %856 = vmatmul.bf16.gmra.mxu0 %v2035_v45  ;;  %896 = vmatmul.bf16.gmra.mxu2 %v2099_v46  ;;  %v467_v45 = vld [vmem:[#allocation2 + $0x30] sm:$0xff] }
 0x12b   : > { %945 = vmatmul.bf16.gmra.mxu1 %v2039_v47  ;;  %985 = vmatmul.bf16.gmra.mxu3 %v2103_v48 }
 0x137   : > { %v822_v49 = vpop.f32.mrf.mxu0 }
 0x138   : > { %v911_v51 = vpop.f32.mrf.mxu1 }
 0x139   : > { %v912_v52 = vadd.f32 %v911_v51, %v822_v49  ;;  %v483_v51 = vld [vmem:[#allocation2 + $0x70] sm:$0xff] }
 0x13b   : > { %v991_v53 = vadd.f32 %v912_v52, %v461_v50 }
 0x13d   : > { %1023 = vst [vmem:[#allocation2 + $0xb0] sm:$0xff] %v991_v53  ;;  %v862_v54 = vpop.f32.mrf.mxu2 }
 0x13e   : > { %v951_v56 = vpop.f32.mrf.mxu3 }
 0x13f   : > { %v952_v57 = vadd.f32 %v951_v56, %v862_v54  ;;  %v824_v58 = vpop.f32.mrf.mxu0 }
 0x140   : > { %v913_v60 = vpop.f32.mrf.mxu1 }
 0x141   : > { %v1007_v61 = vadd.f32 %v952_v57, %v477_v55  ;;  %v914_v62 = vadd.f32 %v913_v60, %v824_v58  ;;  %v468_v55 = vld [vmem:[#allocation2 + $0x48] sm:$0xff] }
 0x143   : > { %1039 = vst [vmem:[#allocation2 + $0x38] sm:$0xff] %v1007_v61  ;;  %v992_v63 = vadd.f32 %v914_v62, %v462_v59  ;;  %v484_v61 = vld [vmem:[#allocation2 + $0xc0] sm:$0xff] }
 0x145   : > { %1024 = vst [vmem:[#allocation2] sm:$0xff] %v992_v63  ;;  %v864_v0 = vpop.f32.mrf.mxu2 }
 0x146   : > { %v953_v2 = vpop.f32.mrf.mxu3 }
 0x147   : > { %v954_v3 = vadd.f32 %v953_v2, %v864_v0  ;;  %v827_v4 = vpop.f32.mrf.mxu0 }
 0x148   : > { %v916_v6 = vpop.f32.mrf.mxu1 }
 0x149   : > { %v1008_v7 = vadd.f32 %v954_v3, %v478_v1  ;;  %v917_v8 = vadd.f32 %v916_v6, %v827_v4  ;;  %v469_v1 = vld [vmem:[#allocation2 + $0x80] sm:$0xff] }
 0x14b   : > { %1040 = vst [vmem:[#allocation2 + $0x58] sm:$0xff] %v1008_v7  ;;  %v993_v9 = vadd.f32 %v917_v8, %v463_v5  ;;  %v485_v7 = vld [vmem:[#allocation2 + $0xa8] sm:$0xff] }
 0x14d   : > { %1025 = vst [vmem:[#allocation2 + $0xd8] sm:$0xff] %v993_v9  ;;  %v867_v10 = vpop.f32.mrf.mxu2 }
 0x14e   : > { %v956_v12 = vpop.f32.mrf.mxu3 }
 0x14f   : > { %v957_v13 = vadd.f32 %v956_v12, %v867_v10  ;;  %v829_v14 = vpop.f32.mrf.mxu0 }
 0x150   : > { %v918_v16 = vpop.f32.mrf.mxu1 }
 0x151   : > { %v1009_v17 = vadd.f32 %v957_v13, %v479_v11  ;;  %v919_v18 = vadd.f32 %v918_v16, %v829_v14  ;;  %v470_v11 = vld [vmem:[#allocation2 + $0x88] sm:$0xff] }
 0x153   : > { %1041 = vst [vmem:[#allocation2 + $0x40] sm:$0xff] %v1009_v17  ;;  %v994_v19 = vadd.f32 %v919_v18, %v464_v15  ;;  %v486_v17 = vld [vmem:[#allocation2 + $0xd0] sm:$0xff] }
 0x155   : > { %1026 = vst [vmem:[#allocation2 + $0x18] sm:$0xff] %v994_v19  ;;  %v869_v20 = vpop.f32.mrf.mxu2 }
 0x156   : > { %v958_v22 = vpop.f32.mrf.mxu3 }
 0x157   : > { %v959_v23 = vadd.f32 %v958_v22, %v869_v20  ;;  %v832_v24 = vpop.f32.mrf.mxu0 }
 0x158   : > { %v921_v26 = vpop.f32.mrf.mxu1 }
 0x159   : > { %v1010_v27 = vadd.f32 %v959_v23, %v480_v21  ;;  %v922_v28 = vadd.f32 %v921_v26, %v832_v24  ;;  %v471_v21 = vld [vmem:[#allocation2 + $0xe8] sm:$0xff] }
 0x15b   : > { %1042 = vst [vmem:[#allocation2 + $0xc8] sm:$0xff] %v1010_v27  ;;  %v995_v29 = vadd.f32 %v922_v28, %v465_v25  ;;  %v487_v27 = vld [vmem:[#allocation2 + $0x10] sm:$0xff] }
 0x15d   : > { %1027 = vst [vmem:[#allocation2 + $0x50] sm:$0xff] %v995_v29  ;;  %v872_v30 = vpop.f32.mrf.mxu2 }
 0x15e   : > { %v961_v32 = vpop.f32.mrf.mxu3 }
 0x15f   : > { %v962_v33 = vadd.f32 %v961_v32, %v872_v30  ;;  %v834_v34 = vpop.f32.mrf.mxu0 }
 0x160   : > { %v923_v36 = vpop.f32.mrf.mxu1 }
 0x161   : > { %v1011_v37 = vadd.f32 %v962_v33, %v481_v31  ;;  %v924_v38 = vadd.f32 %v923_v36, %v834_v34  ;;  %v472_v31 = vld [vmem:[#allocation2 + $0xb8] sm:$0xff] }
 0x163   : > { %1043 = vst [vmem:[#allocation2 + $0xe0] sm:$0xff] %v1011_v37  ;;  %v996_v39 = vadd.f32 %v924_v38, %v466_v35  ;;  %v488_v37 = vld [vmem:[#allocation2 + $0x28] sm:$0xff] }
 0x165   : > { %1028 = vst [vmem:[#allocation2 + $0x68] sm:$0xff] %v996_v39  ;;  %v874_v40 = vpop.f32.mrf.mxu2 }
 0x166   : > { %v963_v42 = vpop.f32.mrf.mxu3 }
 0x167   : > { %v964_v43 = vadd.f32 %v963_v42, %v874_v40  ;;  %v837_v44 = vpop.f32.mrf.mxu0 }
 0x168   : > { %v926_v46 = vpop.f32.mrf.mxu1 }
 0x169   : > { %v1012_v47 = vadd.f32 %v964_v43, %v482_v41  ;;  %v927_v48 = vadd.f32 %v926_v46, %v837_v44  ;;  %v473_v41 = vld [vmem:[#allocation2 + $0x60] sm:$0xff] }
 0x16b   : > { %1044 = vst [vmem:[#allocation2 + $0x90] sm:$0xff] %v1012_v47  ;;  %v997_v49 = vadd.f32 %v927_v48, %v467_v45  ;;  %v489_v47 = vld [vmem:[#allocation2 + $0xa0] sm:$0xff] }
 0x16d   : > { %1029 = vst [vmem:[#allocation2 + $0x30] sm:$0xff] %v997_v49  ;;  %v877_v50 = vpop.f32.mrf.mxu2 }
 0x16e   : > { %v966_v52 = vpop.f32.mrf.mxu3 }
 0x16f   : > { %v967_v53 = vadd.f32 %v966_v52, %v877_v50  ;;  %v839_v54 = vpop.f32.mrf.mxu0 }
 0x170   : > { %v928_v56 = vpop.f32.mrf.mxu1 }
 0x171   : > { %v1013_v57 = vadd.f32 %v967_v53, %v483_v51  ;;  %v929_v58 = vadd.f32 %v928_v56, %v839_v54  ;;  %v474_v51 = vld [vmem:[#allocation2 + $0xf0] sm:$0xff] }
 0x173   : > { %1045 = vst [vmem:[#allocation2 + $0x70] sm:$0xff] %v1013_v57  ;;  %v998_v59 = vadd.f32 %v929_v58, %v468_v55  ;;  %v490_v57 = vld [vmem:[#allocation2 + $0xf8] sm:$0xff] }
 0x175   : > { %1030 = vst [vmem:[#allocation2 + $0x48] sm:$0xff] %v998_v59  ;;  %v879_v60 = vpop.f32.mrf.mxu2 }
 0x176   : > { %v968_v62 = vpop.f32.mrf.mxu3 }
 0x177   : > { %v969_v63 = vadd.f32 %v968_v62, %v879_v60  ;;  %v842_v0 = vpop.f32.mrf.mxu0 }
 0x178   : > { %v931_v2 = vpop.f32.mrf.mxu1 }
 0x179   : > { %v1014_v3 = vadd.f32 %v969_v63, %v484_v61  ;;  %v932_v4 = vadd.f32 %v931_v2, %v842_v0  ;;  %v475_v61 = vld [vmem:[#allocation2 + $0x8] sm:$0xff] }
 0x17b   : > { %1046 = vst [vmem:[#allocation2 + $0xc0] sm:$0xff] %v1014_v3  ;;  %v999_v5 = vadd.f32 %v932_v4, %v469_v1  ;;  %v491_v3 = vld [vmem:[#allocation2 + $0x20] sm:$0xff] }
 0x17d   : > { %1031 = vst [vmem:[#allocation2 + $0x80] sm:$0xff] %v999_v5  ;;  %v882_v6 = vpop.f32.mrf.mxu2 }
 0x17e   : > { %v971_v8 = vpop.f32.mrf.mxu3 }
 0x17f   : > { %v972_v9 = vadd.f32 %v971_v8, %v882_v6  ;;  %v844_v10 = vpop.f32.mrf.mxu0 }
 0x180   : > { %v933_v12 = vpop.f32.mrf.mxu1 }
 0x181   : > { %v1015_v13 = vadd.f32 %v972_v9, %v485_v7  ;;  %v934_v14 = vadd.f32 %v933_v12, %v844_v10  ;;  %v476_v7 = vld [vmem:[#allocation2 + $0x78] sm:$0xff] }
 0x183   : > { %1047 = vst [vmem:[#allocation2 + $0xa8] sm:$0xff] %v1015_v13  ;;  %v1000_v15 = vadd.f32 %v934_v14, %v470_v11  ;;  %v492_v13 = vld [vmem:[#allocation2 + $0x98] sm:$0xff] }
 0x185   : > { %1032 = vst [vmem:[#allocation2 + $0x88] sm:$0xff] %v1000_v15  ;;  %v884_v16 = vpop.f32.mrf.mxu2 }
 0x186   : > { %v973_v18 = vpop.f32.mrf.mxu3 }
 0x187   : > { %v974_v19 = vadd.f32 %v973_v18, %v884_v16  ;;  %v847_v20 = vpop.f32.mrf.mxu0 }
 0x188   : > { %v936_v22 = vpop.f32.mrf.mxu1 }
 0x189   : > { %v1016_v23 = vadd.f32 %v974_v19, %v486_v17  ;;  %v937_v24 = vadd.f32 %v936_v22, %v847_v20 }
 0x18b   : > { %1048 = vst [vmem:[#allocation2 + $0xd0] sm:$0xff] %v1016_v23  ;;  %v1001_v25 = vadd.f32 %v937_v24, %v471_v21 }
 0x18d   : > { %1033 = vst [vmem:[#allocation2 + $0xe8] sm:$0xff] %v1001_v25  ;;  %v887_v26 = vpop.f32.mrf.mxu2 }
 0x18e   : > { %v976_v28 = vpop.f32.mrf.mxu3 }
 0x18f   : > { %v977_v29 = vadd.f32 %v976_v28, %v887_v26  ;;  %v849_v30 = vpop.f32.mrf.mxu0 }
 0x190   : > { %v938_v32 = vpop.f32.mrf.mxu1 }
 0x191   : > { %v1017_v33 = vadd.f32 %v977_v29, %v487_v27  ;;  %v939_v34 = vadd.f32 %v938_v32, %v849_v30 }
 0x193   : > { %1049 = vst [vmem:[#allocation2 + $0x10] sm:$0xff] %v1017_v33  ;;  %v1002_v35 = vadd.f32 %v939_v34, %v472_v31 }
 0x195   : > { %1034 = vst [vmem:[#allocation2 + $0xb8] sm:$0xff] %v1002_v35  ;;  %v889_v36 = vpop.f32.mrf.mxu2 }
 0x196   : > { %v978_v38 = vpop.f32.mrf.mxu3 }
 0x197   : > { %v979_v39 = vadd.f32 %v978_v38, %v889_v36  ;;  %v852_v40 = vpop.f32.mrf.mxu0 }
 0x198   : > { %v941_v42 = vpop.f32.mrf.mxu1 }
 0x199   : > { %v1018_v43 = vadd.f32 %v979_v39, %v488_v37  ;;  %v942_v44 = vadd.f32 %v941_v42, %v852_v40 }
 0x19b   : > { %1050 = vst [vmem:[#allocation2 + $0x28] sm:$0xff] %v1018_v43  ;;  %v1003_v45 = vadd.f32 %v942_v44, %v473_v41 }
 0x19d   : > { %1035 = vst [vmem:[#allocation2 + $0x60] sm:$0xff] %v1003_v45  ;;  %v892_v46 = vpop.f32.mrf.mxu2 }
 0x19e   : > { %v981_v48 = vpop.f32.mrf.mxu3 }
 0x19f   : > { %v982_v49 = vadd.f32 %v981_v48, %v892_v46  ;;  %v854_v50 = vpop.f32.mrf.mxu0 }
 0x1a0   : > { %v943_v52 = vpop.f32.mrf.mxu1 }
 0x1a1   : > { %v1019_v53 = vadd.f32 %v982_v49, %v489_v47  ;;  %v944_v54 = vadd.f32 %v943_v52, %v854_v50 }
 0x1a3   : > { %1051 = vst [vmem:[#allocation2 + $0xa0] sm:$0xff] %v1019_v53  ;;  %v1004_v55 = vadd.f32 %v944_v54, %v474_v51 }
 0x1a5   : > { %1036 = vst [vmem:[#allocation2 + $0xf0] sm:$0xff] %v1004_v55  ;;  %v894_v56 = vpop.f32.mrf.mxu2 }
 0x1a6   : > { %v983_v58 = vpop.f32.mrf.mxu3 }
 0x1a7   : > { %v984_v59 = vadd.f32 %v983_v58, %v894_v56  ;;  %v857_v60 = vpop.f32.mrf.mxu0 }
 0x1a8   : > { %v946_v62 = vpop.f32.mrf.mxu1 }
 0x1a9   : > { %v1020_v63 = vadd.f32 %v984_v59, %v490_v57  ;;  %v947_v0 = vadd.f32 %v946_v62, %v857_v60 }
 0x1ab   : > { %1052 = vst [vmem:[#allocation2 + $0xf8] sm:$0xff] %v1020_v63  ;;  %v1005_v1 = vadd.f32 %v947_v0, %v475_v61 }
 0x1ad   : > { %1037 = vst [vmem:[#allocation2 + $0x8] sm:$0xff] %v1005_v1  ;;  %v897_v2 = vpop.f32.mrf.mxu2 }
 0x1ae   : > { %v986_v4 = vpop.f32.mrf.mxu3 }
 0x1af   : > { %v987_v5 = vadd.f32 %v986_v4, %v897_v2  ;;  %v859_v6 = vpop.f32.mrf.mxu0 }
 0x1b0   : > { %v948_v8 = vpop.f32.mrf.mxu1 }
 0x1b1   : > { %v1021_v9 = vadd.f32 %v987_v5, %v491_v3  ;;  %v949_v10 = vadd.f32 %v948_v8, %v859_v6 }
 0x1b3   : > { %1053 = vst [vmem:[#allocation2 + $0x20] sm:$0xff] %v1021_v9  ;;  %v1006_v11 = vadd.f32 %v949_v10, %v476_v7 }
 0x1b5   : > { %1038 = vst [vmem:[#allocation2 + $0x78] sm:$0xff] %v1006_v11  ;;  %v899_v12 = vpop.f32.mrf.mxu2 }
 0x1b6   : > { %v988_v14 = vpop.f32.mrf.mxu3 }
 0x1b7   : > { %v989_v15 = vadd.f32 %v988_v14, %v899_v12  ;;  %1058 = sbr.rel (%p2168_p1) target bundleno = 934 (0x3a6), region = 76 }
 0x1b9   : > { %v1022_v16 = vadd.f32 %v989_v15, %v492_v13 }
 0x1bb   : > { %1054 = vst [vmem:[#allocation2 + $0x98] sm:$0xff] %v1022_v16 }
 0x1bc   : > { %v2416_v17 = vld [vmem:[#allocation11 + $0x38] sm:$0xff]  ;;  %v2415_v19 = vld [vmem:[#allocation11 + $0x30] sm:$0xff]  ;;  %v2414_v21 = vld [vmem:[#allocation11 + $0x28] sm:$0xff] }
 0x1bd   : > { %v2408_v18 = vld [vmem:[#allocation9 + $0x38] sm:$0xff]  ;;  %1219 = vmatpush.bf16.msra.mxu0 %v2416_v17  ;;  %2442 = vmatpush.bf16.msra.mxu3 %v2416_v17  ;;  %v2407_v20 = vld [vmem:[#allocation9 + $0x30] sm:$0xff]  ;;  %v2406_v22 = vld [vmem:[#allocation9 + $0x28] sm:$0xff] }
 0x1be   : > { %1452 = vmatpush.bf16.msra.mxu1 %v2408_v18  ;;  %v2413_v23 = vld [vmem:[#allocation11 + $0x20] sm:$0xff]  ;;  %v2412_v25 = vld [vmem:[#allocation11 + $0x18] sm:$0xff]  ;;  %v2411_v27 = vld [vmem:[#allocation11 + $0x10] sm:$0xff] }
 0x1bf   : > { %v2405_v24 = vld [vmem:[#allocation9 + $0x20] sm:$0xff]  ;;  %v2404_v26 = vld [vmem:[#allocation9 + $0x18] sm:$0xff]  ;;  %v2403_v28 = vld [vmem:[#allocation9 + $0x10] sm:$0xff] }
 0x1c0   : > { %v2410_v29 = vld [vmem:[#allocation11 + $0x8] sm:$0xff]  ;;  %v2409_v31 = vld [vmem:[#allocation11] sm:$0xff]  ;;  %v1107_v32 = vld [vmem:[#allocation2 + $0xb0] sm:$0xff] }
 0x1c1   : > { %1220 = vmatpush.bf16.msra.mxu0 %v2415_v19  ;;  %2443 = vmatpush.bf16.msra.mxu3 %v2415_v19  ;;  %v2402_v30 = vld [vmem:[#allocation9 + $0x8] sm:$0xff]  ;;  %v1108_v33 = vld [vmem:[#allocation2] sm:$0xff]  ;;  %v1132_v35 = vld [vmem:[#allocation2 + $0xd0] sm:$0xff] }
 0x1c2   : > { %1453 = vmatpush.bf16.msra.mxu1 %v2407_v20  ;;  %v1131_v34 = vld [vmem:[#allocation2 + $0xa8] sm:$0xff]  ;;  %v2401_v36 = vld [vmem:[#allocation9] sm:$0xff]  ;;  %v1139_v37 = vpack.c.bf16 %v1108_v33, %v1107_v32  ;;  %v1109_v40 = vld [vmem:[#allocation2 + $0xd8] sm:$0xff] }
 0x1c3   : > { %v1151_v38 = vpack.c.bf16 %v1132_v35, %v1131_v34  ;;  %v2385_v39 = vld [vmem:[%s3300_s0] sm:$0xff]  ;;  %v1110_v41 = vld [vmem:[#allocation2 + $0x18] sm:$0xff]  ;;  %v1133_v42 = vld [vmem:[#allocation2 + $0x10] sm:$0xff] }
 0x1c4   : > { %v1134_v43 = vld [vmem:[#allocation2 + $0x28] sm:$0xff]  ;;  %v1140_v44 = vpack.c.bf16 %v1110_v41, %v1109_v40  ;;  %v1111_v47 = vld [vmem:[#allocation2 + $0x50] sm:$0xff]  ;;  %v1135_v49 = vld [vmem:[#allocation2 + $0xa0] sm:$0xff] }
 0x1c5   : > { %1221 = vmatpush.bf16.msra.mxu0 %v2414_v21  ;;  %2444 = vmatpush.bf16.msra.mxu3 %v2414_v21  ;;  %v1152_v45 = vpack.c.bf16 %v1134_v43, %v1133_v42  ;;  %v2386_v46 = vld [vmem:[%s3300_s0 + $0x8] sm:$0xff]  ;;  %v1136_v50 = vld [vmem:[#allocation2 + $0xf8] sm:$0xff]  ;;  %v2387_v53 = vld [vmem:[%s3300_s0 + $0x10] sm:$0xff] }
 0x1c6   : > { %1454 = vmatpush.bf16.msra.mxu1 %v2406_v22  ;;  %v1112_v48 = vld [vmem:[#allocation2 + $0x68] sm:$0xff]  ;;  %v1153_v52 = vpack.c.bf16 %v1136_v50, %v1135_v49  ;;  %v1113_v54 = vld [vmem:[#allocation2 + $0x30] sm:$0xff]  ;;  %v1137_v56 = vld [vmem:[#allocation2 + $0x20] sm:$0xff] }
 0x1c7   : > { %v1141_v51 = vpack.c.bf16 %v1112_v48, %v1111_v47  ;;  %v1114_v55 = vld [vmem:[#allocation2 + $0x48] sm:$0xff]  ;;  %v1138_v57 = vld [vmem:[#allocation2 + $0x98] sm:$0xff]  ;;  %v1115_v61 = vld [vmem:[#allocation2 + $0x80] sm:$0xff] }
 0x1c8   : > { %v1142_v58 = vpack.c.bf16 %v1114_v55, %v1113_v54  ;;  %v1154_v59 = vpack.c.bf16 %v1138_v57, %v1137_v56  ;;  %v2388_v60 = vld [vmem:[%s3300_s0 + $0x18] sm:$0xff]  ;;  %v1116_v62 = vld [vmem:[#allocation2 + $0x88] sm:$0xff]  ;;  %v2397_v0 = vld [vmem:[%s3300_s0 + $0x60] sm:$0xff] }
 0x1c9   : > { %1222 = vmatpush.bf16.msra.mxu0 %v2413_v23  ;;  %2445 = vmatpush.bf16.msra.mxu3 %v2413_v23  ;;  %v1143_v63 = vpack.c.bf16 %v1116_v62, %v1115_v61  ;;  %v2389_v1 = vld [vmem:[%s3300_s0 + $0x20] sm:$0xff]  ;;  %v2424_v2 = vld [vmem:[#allocation12 + $0x38] sm:$0xff]  ;;  %v1117_v3 = vld [vmem:[#allocation2 + $0xe8] sm:$0xff] }
 0x1ca   : > { %1455 = vmatpush.bf16.msra.mxu1 %v2405_v24  ;;  %1653 = vmatpush.bf16.msra.mxu2 %v2424_v2  ;;  %v1118_v4 = vld [vmem:[#allocation2 + $0xb8] sm:$0xff]  ;;  %v2398_v6 = vld [vmem:[%s3300_s0 + $0x68] sm:$0xff]  ;;  %v2423_v8 = vld [vmem:[#allocation12 + $0x30] sm:$0xff] }
 0x1cb   : > { %v1144_v5 = vpack.c.bf16 %v1118_v4, %v1117_v3  ;;  %v2390_v7 = vld [vmem:[%s3300_s0 + $0x28] sm:$0xff]  ;;  %v2421_v10 = vld [vmem:[#allocation12 + $0x20] sm:$0xff]  ;;  %v1120_v12 = vld [vmem:[#allocation2 + $0xf0] sm:$0xff] }
 0x1cc   : > { %v2422_v9 = vld [vmem:[#allocation12 + $0x28] sm:$0xff]  ;;  %v1119_v11 = vld [vmem:[#allocation2 + $0x60] sm:$0xff]  ;;  %v2399_v14 = vld [vmem:[%s3300_s0 + $0x70] sm:$0xff] }
 0x1cd   : > { %1223 = vmatpush.bf16.msra.mxu0 %v2412_v25  ;;  %2446 = vmatpush.bf16.msra.mxu3 %v2412_v25  ;;  %v1145_v13 = vpack.c.bf16 %v1120_v12, %v1119_v11  ;;  %v2420_v15 = vld [vmem:[#allocation12 + $0x18] sm:$0xff]  ;;  %v2391_v16 = vld [vmem:[%s3300_s0 + $0x30] sm:$0xff]  ;;  %v2417_v19 = vld [vmem:[#allocation12] sm:$0xff] }
 0x1ce   : > { %1456 = vmatpush.bf16.msra.mxu1 %v2404_v26  ;;  %1654 = vmatpush.bf16.msra.mxu2 %v2423_v8  ;;  %v2419_v17 = vld [vmem:[#allocation12 + $0x10] sm:$0xff]  ;;  %v1122_v21 = vld [vmem:[#allocation2 + $0x78] sm:$0xff] }
 0x1cf   : > { %v2400_v23 = vld [vmem:[%s3300_s0 + $0x78] sm:$0xff]  ;;  %v1128_v54 = vld [vmem:[#allocation2 + $0x90] sm:$0xff] }
 0x1d0   : > { %v1123_v25 = vld [vmem:[#allocation2 + $0x38] sm:$0xff]  ;;  %v1129_v4 = vld [vmem:[#allocation2 + $0x70] sm:$0xff] }
 0x1d1   : > { %1224 = vmatpush.bf16.msra.mxu0 %v2411_v27  ;;  %2447 = vmatpush.bf16.msra.mxu3 %v2411_v27 }
 0x1d2   : > { %1457 = vmatpush.bf16.msra.mxu1 %v2403_v28  ;;  %1655 = vmatpush.bf16.msra.mxu2 %v2422_v9 }
 0x1d5   : > { %1225 = vmatpush.bf16.msra.mxu0 %v2410_v29  ;;  %2448 = vmatpush.bf16.msra.mxu3 %v2410_v29  ;;  %v2393_v29 = vld [vmem:[%s3300_s0 + $0x40] sm:$0xff] }
 0x1d6   : > { %1458 = vmatpush.bf16.msra.mxu1 %v2402_v30  ;;  %1656 = vmatpush.bf16.msra.mxu2 %v2421_v10 }
 0x1d9   : > { %1226 = vmatpush.bf16.msra.mxu0 %v2409_v31  ;;  %2449 = vmatpush.bf16.msra.mxu3 %v2409_v31 }
 0x1da   : > { %1459 = vmatpush.bf16.msra.mxu1 %v2401_v36  ;;  %1657 = vmatpush.bf16.msra.mxu2 %v2420_v15 }
 0x1dc   : > { %1227 = vmatmul.bf16.vlgmr.msra.gmra.mxu0 %v1139_v37  ;;  %1287 = vmatmul.bf16.vlgmr.msra.gmra.mxu3 %v1151_v38  ;;  %v1125_v38 = vld [vmem:[#allocation2 + $0x40] sm:$0xff] }
 0x1dd   : > { %2450 = vmatpush.bf16.msrb.mxu3 %v2408_v18  ;;  %1460 = vmatmul.bf16.vlgmr.msra.gmra.mxu1 %v2385_v39  ;;  %v2418_v18 = vld [vmem:[#allocation12 + $0x8] sm:$0xff] }
 0x1de   : > { %1658 = vmatpush.bf16.msra.mxu2 %v2419_v17  ;;  %v1126_v39 = vld [vmem:[#allocation2 + $0xc8] sm:$0xff] }
 0x1df   : > { %v1148_v42 = vpack.c.bf16 %v1126_v39, %v1125_v38 }
 0x1e1   : > { %2451 = vmatpush.bf16.msrb.mxu3 %v2407_v20  ;;  %v1121_v20 = vld [vmem:[#allocation2 + $0x8] sm:$0xff] }
 0x1e2   : > { %1659 = vmatpush.bf16.msra.mxu2 %v2418_v18 }
 0x1e5   : > { %2452 = vmatpush.bf16.msrb.mxu3 %v2406_v22  ;;  %v1146_v22 = vpack.c.bf16 %v1122_v21, %v1121_v20 }
 0x1e6   : > { %1660 = vmatpush.bf16.msra.mxu2 %v2417_v19 }
 0x1e9   : > { %2453 = vmatpush.bf16.msrb.mxu3 %v2405_v24  ;;  %v2392_v24 = vld [vmem:[%s3300_s0 + $0x38] sm:$0xff] }
 0x1ec   : > { %1232 = vmatmul.bf16.gmra.mxu0 %v1140_v44  ;;  %1292 = vmatmul.bf16.gmra.mxu3 %v1152_v45  ;;  %v2394_v44 = vld [vmem:[%s3300_s0 + $0x48] sm:$0xff] }
 0x1ed   : > { %2454 = vmatpush.bf16.msrb.mxu3 %v2404_v26  ;;  %1465 = vmatmul.bf16.gmra.mxu1 %v2386_v46  ;;  %v1124_v26 = vld [vmem:[#allocation2 + $0x58] sm:$0xff] }
 0x1ee   : > { %v1147_v27 = vpack.c.bf16 %v1124_v26, %v1123_v25 }
 0x1f1   : > { %2455 = vmatpush.bf16.msrb.mxu3 %v2403_v28 }
 0x1f5   : > { %2456 = vmatpush.bf16.msrb.mxu3 %v2402_v30 }
 0x1f9   : > { %2457 = vmatpush.bf16.msrb.mxu3 %v2401_v36 }
 0x1fc   : > { %1237 = vmatmul.bf16.gmra.mxu0 %v1141_v51  ;;  %1297 = vmatmul.bf16.gmra.mxu3 %v1153_v52 }
 0x1fd   : > { %1470 = vmatmul.bf16.gmra.mxu1 %v2387_v53  ;;  %2458 = vmatpush.bf16.msra.mxu3 %v2424_v2  ;;  %v1127_v53 = vld [vmem:[#allocation2 + $0xe0] sm:$0xff] }
 0x1fe   : > { %v1149_v57 = vpack.c.bf16 %v1128_v54, %v1127_v53 }
 0x201   : > { %2459 = vmatpush.bf16.msra.mxu3 %v2423_v8 }
 0x205   : > { %2460 = vmatpush.bf16.msra.mxu3 %v2422_v9 }
 0x209   : > { %2461 = vmatpush.bf16.msra.mxu3 %v2421_v10  ;;  %v2396_v10 = vld [vmem:[%s3300_s0 + $0x58] sm:$0xff] }
 0x20c   : > { %1242 = vmatmul.bf16.gmra.mxu0 %v1142_v58  ;;  %1302 = vmatmul.bf16.gmra.mxu3 %v1154_v59  ;;  %v2395_v59 = vld [vmem:[%s3300_s0 + $0x50] sm:$0xff] }
 0x20d   : > { %1475 = vmatmul.bf16.gmra.mxu1 %v2388_v60  ;;  %2462 = vmatpush.bf16.msra.mxu3 %v2420_v15 }
 0x211   : > { %2463 = vmatpush.bf16.msra.mxu3 %v2419_v17 }
 0x215   : > { %2464 = vmatpush.bf16.msra.mxu3 %v2418_v18 }
 0x219   : > { %2465 = vmatpush.bf16.msra.mxu3 %v2417_v19 }
 0x21c   : > { %1247 = vmatmul.bf16.gmra.mxu0 %v1143_v63  ;;  %1520 = vmatmul.bf16.vlgmr.msrb.gmra.mxu3 %v2397_v0 }
 0x21d   : > { %1480 = vmatmul.bf16.gmra.mxu1 %v2389_v1 }
 0x22c   : > { %1252 = vmatmul.bf16.gmra.mxu0 %v1144_v5  ;;  %1525 = vmatmul.bf16.gmra.mxu3 %v2398_v6  ;;  %v1130_v5 = vld [vmem:[#allocation2 + $0xc0] sm:$0xff] }
 0x22d   : > { %1485 = vmatmul.bf16.gmra.mxu1 %v2390_v7  ;;  %v1150_v8 = vpack.c.bf16 %v1130_v5, %v1129_v4 }
 0x23c   : > { %1257 = vmatmul.bf16.gmra.mxu0 %v1145_v13  ;;  %1530 = vmatmul.bf16.gmra.mxu3 %v2399_v14 }
 0x23d   : > { %1490 = vmatmul.bf16.gmra.mxu1 %v2391_v16 }
 0x24c   : > { %1262 = vmatmul.bf16.gmra.mxu0 %v1146_v22  ;;  %1535 = vmatmul.bf16.gmra.mxu3 %v2400_v23 }
 0x24d   : > { %1495 = vmatmul.bf16.gmra.mxu1 %v2392_v24 }
 0x259   : > { %v1228_v28 = vpop.f32.mrf.mxu0 }
 0x25a   : > { %v1461_v30 = vpop.f32.mrf.mxu1 }
 0x25b   : > { %v1462_v32 = vadd.f32 %v1461_v30, %v1228_v28 }
 0x25c   : > { %1267 = vmatmul.bf16.gmra.mxu0 %v1147_v27 }
 0x25d   : > { %1500 = vmatmul.bf16.gmra.mxu1 %v2393_v29  ;;  %v1541_v36 = vmax.f32 %v1462_v32, 0.0 }
 0x25f   : > { %v3412_v31 = vpop.f32.mrf.mxu3 }
 0x261   : > { %v1230_v33 = vpop.f32.mrf.mxu0 }
 0x262   : > { %v1463_v34 = vpop.f32.mrf.mxu1 }
 0x263   : > { %v1464_v35 = vadd.f32 %v1463_v34, %v1230_v33 }
 0x265   : > { %v1542_v37 = vmax.f32 %v1464_v35, 0.0 }
 0x267   : > { %v3414_v40 = vpop.f32.mrf.mxu3  ;;  %v1573_v41 = vpack.c.bf16 %v1542_v37, %v1541_v36 }
 0x269   : > { %1661 = vmatmul.bf16.vlgmr.msra.gmra.mxu2 %v1573_v41  ;;  %v1233_v43 = vpop.f32.mrf.mxu0 }
 0x26a   : > { %v1466_v45 = vpop.f32.mrf.mxu1 }
 0x26b   : > { %v1467_v47 = vadd.f32 %v1466_v45, %v1233_v43 }
 0x26c   : > { %1272 = vmatmul.bf16.gmra.mxu0 %v1148_v42 }
 0x26d   : > { %1505 = vmatmul.bf16.gmra.mxu1 %v2394_v44  ;;  %v1543_v51 = vmax.f32 %v1467_v47, 0.0 }
 0x26f   : > { %v3417_v46 = vpop.f32.mrf.mxu3 }
 0x271   : > { %v1235_v48 = vpop.f32.mrf.mxu0 }
 0x272   : > { %v1468_v49 = vpop.f32.mrf.mxu1 }
 0x273   : > { %v1469_v50 = vadd.f32 %v1468_v49, %v1235_v48 }
 0x275   : > { %v1544_v52 = vmax.f32 %v1469_v50, 0.0 }
 0x277   : > { %v3419_v55 = vpop.f32.mrf.mxu3  ;;  %v1574_v56 = vpack.c.bf16 %v1544_v52, %v1543_v51 }
 0x279   : > { %1666 = vmatmul.bf16.gmra.mxu2 %v1574_v56  ;;  %v1238_v58 = vpop.f32.mrf.mxu0 }
 0x27a   : > { %v1471_v60 = vpop.f32.mrf.mxu1 }
 0x27b   : > { %v1472_v62 = vadd.f32 %v1471_v60, %v1238_v58 }
 0x27c   : > { %1277 = vmatmul.bf16.gmra.mxu0 %v1149_v57 }
 0x27d   : > { %1510 = vmatmul.bf16.gmra.mxu1 %v2395_v59  ;;  %v1545_v2 = vmax.f32 %v1472_v62, 0.0 }
 0x27f   : > { %v3422_v61 = vpop.f32.mrf.mxu3 }
 0x281   : > { %v1240_v63 = vpop.f32.mrf.mxu0 }
 0x282   : > { %v1473_v0 = vpop.f32.mrf.mxu1 }
 0x283   : > { %v1474_v1 = vadd.f32 %v1473_v0, %v1240_v63 }
 0x285   : > { %v1546_v3 = vmax.f32 %v1474_v1, 0.0 }
 0x287   : > { %v3424_v6 = vpop.f32.mrf.mxu3  ;;  %v1575_v7 = vpack.c.bf16 %v1546_v3, %v1545_v2 }
 0x289   : > { %1671 = vmatmul.bf16.gmra.mxu2 %v1575_v7  ;;  %v1243_v9 = vpop.f32.mrf.mxu0 }
 0x28a   : > { %v1476_v11 = vpop.f32.mrf.mxu1 }
 0x28b   : > { %v1477_v13 = vadd.f32 %v1476_v11, %v1243_v9 }
 0x28c   : > { %1282 = vmatmul.bf16.gmra.mxu0 %v1150_v8 }
 0x28d   : > { %1515 = vmatmul.bf16.gmra.mxu1 %v2396_v10  ;;  %v1547_v17 = vmax.f32 %v1477_v13, 0.0 }
 0x28f   : > { %v3427_v12 = vpop.f32.mrf.mxu3 }
 0x291   : > { %v1245_v14 = vpop.f32.mrf.mxu0 }
 0x292   : > { %v1478_v15 = vpop.f32.mrf.mxu1 }
 0x293   : > { %v1479_v16 = vadd.f32 %v1478_v15, %v1245_v14 }
 0x295   : > { %v1548_v18 = vmax.f32 %v1479_v16, 0.0 }
 0x297   : > { %v3429_v19 = vpop.f32.mrf.mxu3  ;;  %v1576_v20 = vpack.c.bf16 %v1548_v18, %v1547_v17 }
 0x299   : > { %1676 = vmatmul.bf16.gmra.mxu2 %v1576_v20  ;;  %v1248_v21 = vpop.f32.mrf.mxu0 }
 0x29a   : > { %v1481_v22 = vpop.f32.mrf.mxu1 }
 0x29b   : > { %v1482_v24 = vadd.f32 %v1481_v22, %v1248_v21 }
 0x29d   : > { %v1549_v28 = vmax.f32 %v1482_v24, 0.0 }
 0x29f   : > { %v1521_v23 = vpop.f32.mrf.mxu3 }
 0x2a0   : > { %v1522_v30 = vadd.f32 %v1521_v23, %v3412_v31 }
 0x2a1   : > { %v1250_v25 = vpop.f32.mrf.mxu0 }
 0x2a2   : > { %v1483_v26 = vpop.f32.mrf.mxu1  ;;  %v1565_v36 = vmax.f32 %v1522_v30, 0.0 }
 0x2a3   : > { %v1484_v27 = vadd.f32 %v1483_v26, %v1250_v25 }
 0x2a5   : > { %v1550_v29 = vmax.f32 %v1484_v27, 0.0 }
 0x2a7   : > { %v1523_v32 = vpop.f32.mrf.mxu3  ;;  %v1577_v33 = vpack.c.bf16 %v1550_v29, %v1549_v28 }
 0x2a8   : > { %v1524_v34 = vadd.f32 %v1523_v32, %v3414_v40 }
 0x2a9   : > { %1681 = vmatmul.bf16.gmra.mxu2 %v1577_v33  ;;  %v1253_v35 = vpop.f32.mrf.mxu0 }
 0x2aa   : > { %v1566_v37 = vmax.f32 %v1524_v34, 0.0  ;;  %v1486_v38 = vpop.f32.mrf.mxu1 }
 0x2ab   : > { %v1487_v42 = vadd.f32 %v1486_v38, %v1253_v35 }
 0x2ac   : > { %v1585_v39 = vpack.c.bf16 %v1566_v37, %v1565_v36 }
 0x2ad   : > { %v1551_v47 = vmax.f32 %v1487_v42, 0.0 }
 0x2ae   : > { %1721 = vmatmul.bf16.vlgmr.msra.gmra.mxu3 %v1585_v39 }
 0x2af   : > { %v1526_v41 = vpop.f32.mrf.mxu3 }
 0x2b0   : > { %v1527_v31 = vadd.f32 %v1526_v41, %v3417_v46 }
 0x2b1   : > { %v1255_v43 = vpop.f32.mrf.mxu0 }
 0x2b2   : > { %v1488_v44 = vpop.f32.mrf.mxu1  ;;  %v1567_v52 = vmax.f32 %v1527_v31, 0.0 }
 0x2b3   : > { %v1489_v45 = vadd.f32 %v1488_v44, %v1255_v43 }
 0x2b5   : > { %v1552_v48 = vmax.f32 %v1489_v45, 0.0 }
 0x2b7   : > { %v1528_v49 = vpop.f32.mrf.mxu3  ;;  %v1578_v50 = vpack.c.bf16 %v1552_v48, %v1551_v47 }
 0x2b8   : > { %v1529_v40 = vadd.f32 %v1528_v49, %v3419_v55 }
 0x2b9   : > { %1686 = vmatmul.bf16.gmra.mxu2 %v1578_v50  ;;  %v1258_v51 = vpop.f32.mrf.mxu0 }
 0x2ba   : > { %v1568_v53 = vmax.f32 %v1529_v40, 0.0  ;;  %v1491_v54 = vpop.f32.mrf.mxu1 }
 0x2bb   : > { %v1492_v58 = vadd.f32 %v1491_v54, %v1258_v51 }
 0x2bc   : > { %v1586_v56 = vpack.c.bf16 %v1568_v53, %v1567_v52 }
 0x2bd   : > { %v1553_v63 = vmax.f32 %v1492_v58, 0.0 }
 0x2be   : > { %1726 = vmatmul.bf16.gmra.mxu3 %v1586_v56 }
 0x2bf   : > { %v1531_v57 = vpop.f32.mrf.mxu3 }
 0x2c0   : > { %v1532_v46 = vadd.f32 %v1531_v57, %v3422_v61 }
 0x2c1   : > { %v1260_v59 = vpop.f32.mrf.mxu0 }
 0x2c2   : > { %v1493_v60 = vpop.f32.mrf.mxu1  ;;  %v1569_v4 = vmax.f32 %v1532_v46, 0.0 }
 0x2c3   : > { %v1494_v62 = vadd.f32 %v1493_v60, %v1260_v59 }
 0x2c5   : > { %v1554_v0 = vmax.f32 %v1494_v62, 0.0 }
 0x2c7   : > { %v1533_v1 = vpop.f32.mrf.mxu3  ;;  %v1579_v2 = vpack.c.bf16 %v1554_v0, %v1553_v63 }
 0x2c8   : > { %v1534_v55 = vadd.f32 %v1533_v1, %v3424_v6 }
 0x2c9   : > { %1691 = vmatmul.bf16.gmra.mxu2 %v1579_v2  ;;  %v1263_v3 = vpop.f32.mrf.mxu0 }
 0x2ca   : > { %v1570_v5 = vmax.f32 %v1534_v55, 0.0  ;;  %v1496_v7 = vpop.f32.mrf.mxu1 }
 0x2cb   : > { %v1497_v10 = vadd.f32 %v1496_v7, %v1263_v3 }
 0x2cc   : > { %v1587_v8 = vpack.c.bf16 %v1570_v5, %v1569_v4 }
 0x2cd   : > { %v1555_v15 = vmax.f32 %v1497_v10, 0.0 }
 0x2ce   : > { %1731 = vmatmul.bf16.gmra.mxu3 %v1587_v8 }
 0x2cf   : > { %v1536_v9 = vpop.f32.mrf.mxu3 }
 0x2d0   : > { %v1537_v61 = vadd.f32 %v1536_v9, %v3427_v12 }
 0x2d1   : > { %v1265_v11 = vpop.f32.mrf.mxu0 }
 0x2d2   : > { %v1498_v13 = vpop.f32.mrf.mxu1  ;;  %v1571_v21 = vmax.f32 %v1537_v61, 0.0 }
 0x2d3   : > { %v1499_v14 = vadd.f32 %v1498_v13, %v1265_v11 }
 0x2d5   : > { %v1556_v16 = vmax.f32 %v1499_v14, 0.0 }
 0x2d7   : > { %v1538_v17 = vpop.f32.mrf.mxu3  ;;  %v1580_v18 = vpack.c.bf16 %v1556_v16, %v1555_v15 }
 0x2d8   : > { %v1539_v6 = vadd.f32 %v1538_v17, %v3429_v19 }
 0x2d9   : > { %1696 = vmatmul.bf16.gmra.mxu2 %v1580_v18  ;;  %v1268_v20 = vpop.f32.mrf.mxu0 }
 0x2da   : > { %v1572_v22 = vmax.f32 %v1539_v6, 0.0  ;;  %v1501_v23 = vpop.f32.mrf.mxu1 }
 0x2db   : > { %v1502_v25 = vadd.f32 %v1501_v23, %v1268_v20 }
 0x2dc   : > { %v1588_v24 = vpack.c.bf16 %v1572_v22, %v1571_v21 }
 0x2dd   : > { %v1557_v29 = vmax.f32 %v1502_v25, 0.0 }
 0x2de   : > { %1736 = vmatmul.bf16.gmra.mxu3 %v1588_v24 }
 0x2e1   : > { %v1270_v26 = vpop.f32.mrf.mxu0 }
 0x2e2   : > { %v1503_v27 = vpop.f32.mrf.mxu1 }
 0x2e3   : > { %v1504_v28 = vadd.f32 %v1503_v27, %v1270_v26 }
 0x2e5   : > { %v1558_v30 = vmax.f32 %v1504_v28, 0.0 }
 0x2e7   : > { %v1581_v12 = vpack.c.bf16 %v1558_v30, %v1557_v29 }
 0x2e9   : > { %1701 = vmatmul.bf16.gmra.mxu2 %v1581_v12  ;;  %v1273_v32 = vpop.f32.mrf.mxu0 }
 0x2ea   : > { %v1506_v33 = vpop.f32.mrf.mxu1 }
 0x2eb   : > { %v1507_v34 = vadd.f32 %v1506_v33, %v1273_v32 }
 0x2ec   : > { %v1662_v19 = vpop.f32.mrf.mxu2 }
 0x2ed   : > { %1742 = vst [vmem:[%s3315_s4] sm:$0xff] %v1662_v19  ;;  %v1559_v39 = vmax.f32 %v1507_v34, 0.0 }
 0x2f1   : > { %v1275_v35 = vpop.f32.mrf.mxu0 }
 0x2f2   : > { %v1508_v36 = vpop.f32.mrf.mxu1 }
 0x2f3   : > { %v1509_v37 = vadd.f32 %v1508_v36, %v1275_v35 }
 0x2f4   : > { %v1664_v38 = vpop.f32.mrf.mxu2 }
 0x2f5   : > { %v1560_v41 = vmax.f32 %v1509_v37, 0.0  ;;  %1743 = vst [vmem:[%s3315_s4 + $0x8] sm:$0xff] %v1664_v38 }
 0x2f7   : > { %v1582_v42 = vpack.c.bf16 %v1560_v41, %v1559_v39 }
 0x2f9   : > { %1706 = vmatmul.bf16.gmra.mxu2 %v1582_v42  ;;  %v1278_v43 = vpop.f32.mrf.mxu0 }
 0x2fa   : > { %v1511_v44 = vpop.f32.mrf.mxu1 }
 0x2fb   : > { %v1512_v47 = vadd.f32 %v1511_v44, %v1278_v43 }
 0x2fc   : > { %v1667_v45 = vpop.f32.mrf.mxu2 }
 0x2fd   : > { %1744 = vst [vmem:[%s3315_s4 + $0x10] sm:$0xff] %v1667_v45  ;;  %v1561_v40 = vmax.f32 %v1512_v47, 0.0 }
 0x301   : > { %v1280_v48 = vpop.f32.mrf.mxu0 }
 0x302   : > { %v1513_v31 = vpop.f32.mrf.mxu1 }
 0x303   : > { %v1514_v49 = vadd.f32 %v1513_v31, %v1280_v48 }
 0x304   : > { %v1669_v50 = vpop.f32.mrf.mxu2 }
 0x305   : > { %v1562_v51 = vmax.f32 %v1514_v49, 0.0  ;;  %1745 = vst [vmem:[%s3315_s4 + $0x18] sm:$0xff] %v1669_v50 }
 0x307   : > { %v1583_v52 = vpack.c.bf16 %v1562_v51, %v1561_v40 }
 0x309   : > { %1711 = vmatmul.bf16.gmra.mxu2 %v1583_v52  ;;  %v1283_v53 = vpop.f32.mrf.mxu0 }
 0x30a   : > { %v1516_v54 = vpop.f32.mrf.mxu1 }
 0x30b   : > { %v1517_v57 = vadd.f32 %v1516_v54, %v1283_v53 }
 0x30c   : > { %v1672_v56 = vpop.f32.mrf.mxu2 }
 0x30d   : > { %1746 = vst [vmem:[%s3315_s4 + $0x20] sm:$0xff] %v1672_v56  ;;  %v1563_v63 = vmax.f32 %v1517_v57, 0.0 }
 0x311   : > { %v1285_v58 = vpop.f32.mrf.mxu0 }
 0x312   : > { %v1518_v59 = vpop.f32.mrf.mxu1 }
 0x313   : > { %v1519_v60 = vadd.f32 %v1518_v59, %v1285_v58 }
 0x314   : > { %v1674_v62 = vpop.f32.mrf.mxu2 }
 0x315   : > { %v1564_v0 = vmax.f32 %v1519_v60, 0.0  ;;  %1747 = vst [vmem:[%s3315_s4 + $0x28] sm:$0xff] %v1674_v62 }
 0x317   : > { %v1584_v46 = vpack.c.bf16 %v1564_v0, %v1563_v63 }
 0x319   : > { %1716 = vmatmul.bf16.gmra.mxu2 %v1584_v46 }
 0x31c   : > { %v1677_v1 = vpop.f32.mrf.mxu2 }
 0x31d   : > { %1748 = vst [vmem:[%s3315_s4 + $0x30] sm:$0xff] %v1677_v1 }
 0x324   : > { %v1679_v2 = vpop.f32.mrf.mxu2 }
 0x325   : > { %1749 = vst [vmem:[%s3315_s4 + $0x38] sm:$0xff] %v1679_v2 }
 0x32c   : > { %v1682_v55 = vpop.f32.mrf.mxu2 }
 0x32d   : > { %1750 = vst [vmem:[%s3315_s4 + $0x40] sm:$0xff] %v1682_v55 }
 0x331   : > { %v1722_v3 = vpop.f32.mrf.mxu3 }
 0x332   : > { %1766 = vst [vmem:[%s3315_s4 + $0xc0] sm:$0xff] %v1722_v3 }
 0x334   : > { %v1684_v4 = vpop.f32.mrf.mxu2 }
 0x335   : > { %1751 = vst [vmem:[%s3315_s4 + $0x48] sm:$0xff] %v1684_v4 }
 0x339   : > { %v1724_v5 = vpop.f32.mrf.mxu3 }
 0x33a   : > { %1767 = vst [vmem:[%s3315_s4 + $0xc8] sm:$0xff] %v1724_v5 }
 0x33c   : > { %v1687_v7 = vpop.f32.mrf.mxu2 }
 0x33d   : > { %1752 = vst [vmem:[%s3315_s4 + $0x50] sm:$0xff] %v1687_v7 }
 0x341   : > { %v1727_v8 = vpop.f32.mrf.mxu3 }
 0x342   : > { %1768 = vst [vmem:[%s3315_s4 + $0xd0] sm:$0xff] %v1727_v8 }
 0x344   : > { %v1689_v9 = vpop.f32.mrf.mxu2 }
 0x345   : > { %1753 = vst [vmem:[%s3315_s4 + $0x58] sm:$0xff] %v1689_v9 }
 0x349   : > { %v1729_v10 = vpop.f32.mrf.mxu3 }
 0x34a   : > { %1769 = vst [vmem:[%s3315_s4 + $0xd8] sm:$0xff] %v1729_v10 }
 0x34c   : > { %v1692_v11 = vpop.f32.mrf.mxu2 }
 0x34d   : > { %1754 = vst [vmem:[%s3315_s4 + $0x60] sm:$0xff] %v1692_v11 }
 0x351   : > { %v1732_v13 = vpop.f32.mrf.mxu3 }
 0x352   : > { %1770 = vst [vmem:[%s3315_s4 + $0xe0] sm:$0xff] %v1732_v13 }
 0x354   : > { %v1694_v14 = vpop.f32.mrf.mxu2 }
 0x355   : > { %1755 = vst [vmem:[%s3315_s4 + $0x68] sm:$0xff] %v1694_v14 }
 0x359   : > { %v1734_v15 = vpop.f32.mrf.mxu3 }
 0x35a   : > { %1771 = vst [vmem:[%s3315_s4 + $0xe8] sm:$0xff] %v1734_v15 }
 0x35c   : > { %v1697_v16 = vpop.f32.mrf.mxu2 }
 0x35d   : > { %1756 = vst [vmem:[%s3315_s4 + $0x70] sm:$0xff] %v1697_v16 }
 0x361   : > { %v1737_v61 = vpop.f32.mrf.mxu3 }
 0x362   : > { %1772 = vst [vmem:[%s3315_s4 + $0xf0] sm:$0xff] %v1737_v61 }
 0x364   : > { %v1699_v17 = vpop.f32.mrf.mxu2 }
 0x365   : > { %1757 = vst [vmem:[%s3315_s4 + $0x78] sm:$0xff] %v1699_v17 }
 0x369   : > { %v1739_v18 = vpop.f32.mrf.mxu3 }
 0x36a   : > { %1773 = vst [vmem:[%s3315_s4 + $0xf8] sm:$0xff] %v1739_v18 }
 0x36c   : > { %v1702_v6 = vpop.f32.mrf.mxu2 }
 0x36d   : > { %1758 = vst [vmem:[%s3315_s4 + $0x80] sm:$0xff] %v1702_v6 }
 0x374   : > { %v1704_v20 = vpop.f32.mrf.mxu2 }
 0x375   : > { %1759 = vst [vmem:[%s3315_s4 + $0x88] sm:$0xff] %v1704_v20 }
 0x37c   : > { %v1707_v21 = vpop.f32.mrf.mxu2 }
 0x37d   : > { %1760 = vst [vmem:[%s3315_s4 + $0x90] sm:$0xff] %v1707_v21 }
 0x384   : > { %v1709_v22 = vpop.f32.mrf.mxu2 }
 0x385   : > { %1761 = vst [vmem:[%s3315_s4 + $0x98] sm:$0xff] %v1709_v22 }
 0x38c   : > { %v1712_v23 = vpop.f32.mrf.mxu2 }
 0x38d   : > { %1762 = vst [vmem:[%s3315_s4 + $0xa0] sm:$0xff] %v1712_v23 }
 0x394   : > { %v1714_v24 = vpop.f32.mrf.mxu2 }
 0x395   : > { %1763 = vst [vmem:[%s3315_s4 + $0xa8] sm:$0xff] %v1714_v24 }
 0x39c   : > { %v1717_v25 = vpop.f32.mrf.mxu2 }
 0x39d   : > { %1764 = vst [vmem:[%s3315_s4 + $0xb0] sm:$0xff] %v1717_v25 }
 0x3a4   : > { %v1719_v26 = vpop.f32.mrf.mxu2 }
 0x3a5   : > { %1765 = vst [vmem:[%s3315_s4 + $0xb8] sm:$0xff] %v1719_v26 }
 0x3a6 PF: > { %s3600_s8 = sld [smem:[#allocation25_spill]]  ;;  %s1787_s21 = sshll.u32 %s3315_s4, 4  ;;  %s1788_s21 = int_to_ptr.vmem [resolvable:$true] %s1787_s21 }
 0x3a7   : > { %s3601_s16 = sld [smem:[#allocation38_spill]]  ;;  %s1775_s7 = scalar_lea.sflag [#allocation5], %s3297_s25 }
 0x3ac   : > { %s2425_s17 = sshll.u32 %s3600_s8, 8 }
 0x3ad   : > { %s1786_s12 = scalar_lea.hbm %s3601_s16, %s2425_s17  ;;  %s2841_s30 = scalar_lea.hbm %s3601_s16, 512 }
 0x3ae   : > { %s1789_s15 = sshll.u32 %s1786_s12, 4  ;;  %s1790_s15 = int_to_ptr.hbm [resolvable:$true] %s1789_s15 }
 0x3af   : > { %s2835_s5 = sshra.s32 %s1790_s15, 4  ;;  %s2836_s5 = int_to_ptr.hbm [resolvable:$true] %s2835_s5 }
 0x3b0   : > { %s2837_s29 = scalar_lea.hbm %s2836_s5, 256  ;;  %p2842_p6 = scmp.lt.s32.totalorder %s2836_s5, %s3601_s16 }
 0x3b1   : > { %p2838_p7 = scmp.ne.s32.totalorder %s2836_s5, %s2837_s29  ;;  %p2843_p5 = scmp.lt.s32.totalorder %s2841_s30, %s2837_s29 }
 0x3b3   : > { %p2839_p12 = pnand %p2838_p7, %p3253_p11  ;;  %p2844_p9 = por %p2843_p5, %p2842_p6 }
 0x3b5   : > { %p2840_p13 = pneg %p2839_p12 }
 0x3b7   : > { %p2845_p10 = pnand %p2844_p9, %p2840_p13 }
 0x3b9   : > { %2848 = shalt.err (!%p2845_p10)
}
 0x3ba   : > { %s2994_s25 = smov 128   ;;  %s2995_s0 = smov 8  }
 0x3bb   : > { %2484 = dma.vmem_to_hbm [thread:$0]  (%p3253_p11), %s1788_s21, 4096, %s1790_s15, %s1775_s7, %s2994_s25, %s2994_s25, %s2995_s0  }
 0x3bc PF: > { %s3602_s14 = sld [smem:[#allocation21_spill]]  ;;  %p2517_p0 = scmp.ge.s32.totalorder %s2983_s10, 2 }
 0x3be   : > { %p2507_p3 = pnand %p2517_p0, %p3264_p8 }
 0x3c0   : > { %p2508_p2 = pneg %p2507_p3 }
 0x3c2   : > { %s1804_s4 = sand.u32 1, %s3602_s14  }
 0x3c3   : > { %s1805_s24 = scalar_lea.sflag [#allocation5], %s1804_s4 }
 0x3c4   : > { %2926 = dma.done.wait (%p2508_p2), %s1805_s24, 4096  }
 0x3c5   : > { %2928 = vsyncadd (%p2508_p2), %s1805_s24, 4294963200  ;;  %s27_s10 = sadd.s32 1, %s2983_s10   ;;  %s3604_s24 = sld [smem:[#allocation22_spill]] }
 0x3c6   : > { %p3492_p4 = scmp.ge.s32.totalorder %s27_s10, 6   ;;  %s3605_s2 = sld [smem:[#allocation23_spill]] }
 0x3c7   : > { %s3606_s29 = sld [smem:[#allocation31_spill]]  ;;  %s3611_s21 = smov %s2935_s22 }
 0x3c8   : > { %s3607_s30 = sld [smem:[#allocation26_spill]]  ;;  %s3612_s22 = smov %s2939_s23 }
 0x3c9   : > { %s3608_s7 = sld [smem:[#allocation27_spill]]  ;;  %s3613_s23 = smov %s3241_s1 }
 0x3ca   : > { %s3609_s8 = sld [smem:[#allocation29_spill]]  ;;  %s3614_s25 = smov %s2951_s26 }
 0x3cb   : > { %s3610_s9 = sld [smem:[#allocation30_spill]]  ;;  %s3615_s26 = smov %s3164_s20 }
 0x3cc   : > { %s3616_s27 = smov %s2959_s28  ;;  %s3617_s28 = smov %s3605_s2 }
 0x3cd   :  { %26 = sbr.rel (!%p3492_p4) target bundleno = 22 (0x16), region = 133 }
 0x3d2   :  { %1811 = vsyncpa [#allocation4], 1 }
 0x3d3   :  { %1813 = vsyncpa [#allocation4 + $0x1], 1 }
 0x3d4   :  { %1814 = vsyncpa [#allocation7], 1 }
 0x3d5   :  { %1816 = vsyncpa [#allocation7 + $0x1], 1 }
 0x3d6   :  { %1817 = vsyncpa [#allocation10], 1 }
 0x3d7   :  { %1818 = vsyncpa [#allocation13], 1 }
 0x3d8   :  { %1819 = vsyncpa [#allocation5], 1 }
 0x3d9   :  { %1821 = vsyncpa [#allocation5 + $0x1], 1 }

</bundles_post_ra>
